<compile_context>
chip_gen: v6e
topology: v6e:2x2x1
jax: 0.10.0
libtpu: 0.0.40
codegen_flags: <defaults>
</compile_context>

<pallas_src>
import functools

import jax
import jax.numpy as jnp
from jax.experimental import pallas as pl
from jax.experimental.pallas import tpu as pltpu

INPUT_DIM = 8        # financial feature dim
EXPAND_DIM = 784     # input_expander output (logical)
EXPAND_PAD = 896     # 7 * 128 lane-dense padding of EXPAND_DIM
ENC_HIDDEN = 256     # assumed beta-VAE MLP hidden width
LATENT_DIM = 32
HEAD_HIDDEN = 16
HEAD_OUT_PAD = 128   # fused head output width (cols 0..2 used)
STATS_PAD = 128      # fused mean/logvar output width (cols 0..63 used)


def _round_up(v, m):
    return ((v + m - 1) // m) * m


def _beta_vae_financial_kernel(
    # batch-tiled inputs
    x_ref, eps_ref,
    # resident parameters (weights bf16 [in,out], biases f32 [1,out])
    exp_w, exp_b,
    enc1_w, enc1_b,
    mulv_w, mulv_b,          # fused fc_mu | fc_logvar | zero-pad  -> [256,128]
    head1_w, head1_b,        # fused pos1 | conf1 | ret1           -> [32,48]
    head2_w, head2_b,        # block-diagonal pos2/conf2/ret2      -> [48,128]
    dec1_w, dec1_b,
    dec2_w, dec2_b,
    # batch-tiled, lane-dense outputs
    heads_o,                 # [TB,128]  col0=tanh pos, col1=sigmoid conf, col2=return
    recon_o,                 # [TB,896]  cols :784 valid
    expanded_o,              # [TB,896]  cols :784 valid
    stats_o,                 # [TB,128]  cols :32 = mean, 32:64 = logvar
):
    f32 = jnp.float32
    bf16 = jnp.bfloat16

    def dense(h, w_ref, b_ref):
        # bf16 MXU operands, f32 accumulation, f32 bias add.
        return jnp.dot(h.astype(bf16), w_ref[...],
                       preferred_element_type=f32) + b_ref[...]

    def sigmoid(v):
        # exp -> EUP, approx reciprocal -> EUP; keeps the VALU slot free.
        return pl.reciprocal(1.0 + jnp.exp(-v), approx=True)

    def relu(v):
        return jnp.maximum(v, 0.0)

    x = x_ref[...]                                           # [TB, 8]

    # expanded_x = sigmoid(input_expander(x))                # [TB, 896]
    expanded = sigmoid(dense(x, exp_w, exp_b))
    expanded_o[...] = expanded

    # beta_vae.encode(expanded_x): one fused mu/logvar matmul
    h_enc = relu(dense(expanded, enc1_w, enc1_b))            # [TB, 256]
    stats = dense(h_enc, mulv_w, mulv_b)                     # [TB, 128]
    stats_o[...] = stats
    mean = stats[:, :LATENT_DIM]                             # [TB, 32]
    logvar = stats[:, LATENT_DIM:2 * LATENT_DIM]             # [TB, 32]

    # heads on latent = mean (two fused matmuls instead of six tiny ones)
    h_head = relu(dense(mean, head1_w, head1_b))             # [TB, 48]
    raw = dense(h_head, head2_w, head2_b)                    # [TB, 128]
    col = jax.lax.broadcasted_iota(jnp.int32, raw.shape, 1)
    heads_o[...] = jnp.where(
        col == 0, jnp.tanh(raw),
        jnp.where(col == 1, sigmoid(raw), raw))

    # reparameterize + decode
    z = mean + jnp.exp(0.5 * logvar) * eps_ref[...]          # [TB, 32]
    h_dec = relu(dense(z, dec1_w, dec1_b))                   # [TB, 256]
    recon_o[...] = sigmoid(dense(h_dec, dec2_w, dec2_b))     # [TB, 896]


def beta_vae_financial_forward(x, eps, packed_params, *, block_b=256):
    """x: [B, INPUT_DIM] f32, eps: [B, LATENT_DIM] f32 (standard normal draw).

    packed_params: tuple produced by pack_params().
    Returns the same dict as the PyTorch module's forward.
    """
    B = x.shape[0]
    # Adaptive batch tile: never tile wider than the (sublane-rounded) batch.
    TB = max(8, min(_round_up(block_b, 8), _round_up(B, 8)))
    nb = pl.cdiv(B, TB)
    Bp = nb * TB
    if Bp != B:
        x = jnp.pad(x, ((0, Bp - B), (0, 0)))
        eps = jnp.pad(eps, ((0, Bp - B), (0, 0)))

    def batch_spec(width):
        return pl.BlockSpec((TB, width), lambda i: (i, 0))

    def resident_spec(shape):
        # Same block index for every grid step -> parameter stays in VMEM.
        return pl.BlockSpec(shape, lambda i: (0, 0))

    in_specs = [batch_spec(INPUT_DIM), batch_spec(LATENT_DIM)]
    in_specs += [resident_spec(p.shape) for p in packed_params]

    out_shape = (
        jax.ShapeDtypeStruct((Bp, HEAD_OUT_PAD), jnp.float32),   # fused heads
        jax.ShapeDtypeStruct((Bp, EXPAND_PAD), jnp.float32),     # reconstructed
        jax.ShapeDtypeStruct((Bp, EXPAND_PAD), jnp.float32),     # original / expanded
        jax.ShapeDtypeStruct((Bp, STATS_PAD), jnp.float32),      # mean | logvar
    )
    out_specs = [
        batch_spec(HEAD_OUT_PAD),
        batch_spec(EXPAND_PAD),
        batch_spec(EXPAND_PAD),
        batch_spec(STATS_PAD),
    ]

    flops = 2 * Bp * (
        INPUT_DIM * EXPAND_PAD
        + EXPAND_PAD * ENC_HIDDEN
        + ENC_HIDDEN * STATS_PAD
        + LATENT_DIM * 3 * HEAD_HIDDEN
        + 3 * HEAD_HIDDEN * HEAD_OUT_PAD
        + LATENT_DIM * ENC_HIDDEN
        + ENC_HIDDEN * EXPAND_PAD
    )
    transcendentals = Bp * (2 * EXPAND_PAD + LATENT_DIM + 2 * HEAD_OUT_PAD)
    param_bytes = sum(int(p.size) * p.dtype.itemsize for p in packed_params)
    io_bytes = 4 * Bp * (INPUT_DIM + LATENT_DIM
                         + HEAD_OUT_PAD + 2 * EXPAND_PAD + STATS_PAD)
    cost = pl.CostEstimate(
        flops=int(flops),
        transcendentals=int(transcendentals),
        bytes_accessed=int(param_bytes + io_bytes),
    )

    heads, recon, expanded, stats = pl.pallas_call(
        _beta_vae_financial_kernel,
        grid=(nb,),
        out_shape=out_shape,
        in_specs=in_specs,
        out_specs=out_specs,
        compiler_params=pltpu.CompilerParams(
            dimension_semantics=("parallel",),
            vmem_limit_bytes=32 * 1024 * 1024,
        ),
        cost_estimate=cost,
    )(x, eps, *packed_params)

    return {
        "positions": heads[:B, 0],                        # squeeze(-1)
        "confidence": heads[:B, 1],
        "predicted_returns": heads[:B, 2],
        "reconstructed": recon[:B, :EXPAND_DIM],
        "original": expanded[:B, :EXPAND_DIM],
        "mean": stats[:B, :LATENT_DIM],
        "logvar": stats[:B, LATENT_DIM:2 * LATENT_DIM],
    }


# ----------------------------------------------------------------------------
# Parameter construction: PyTorch-Linear-style init, then pack into the fused /
# padded / transposed / bf16 layout the kernel expects.
# ----------------------------------------------------------------------------

def init_torch_style_params(key):
    """nn.Linear-style params: weight [out, in], bias [out], U(-1/sqrt(in), ...)."""

    def linear(k, fan_out, fan_in):
        kw, kb = jax.random.split(k)
        bound = 1.0 / float(fan_in) ** 0.5
        w = jax.random.uniform(kw, (fan_out, fan_in), jnp.float32, -bound, bound)
        b = jax.random.uniform(kb, (fan_out,), jnp.float32, -bound, bound)
        return w, b

    keys = jax.random.split(key, 12)
    p = {}
    p["exp"] = linear(keys[0], EXPAND_DIM, INPUT_DIM)     # input_expander
    p["enc1"] = linear(keys[1], ENC_HIDDEN, EXPAND_DIM)   # encoder fc1
    p["mu"] = linear(keys[2], LATENT_DIM, ENC_HIDDEN)     # fc_mu
    p["lv"] = linear(keys[3], LATENT_DIM, ENC_HIDDEN)     # fc_logvar
    p["pos1"] = linear(keys[4], HEAD_HIDDEN, LATENT_DIM)  # position head fc1
    p["pos2"] = linear(keys[5], 1, HEAD_HIDDEN)           # position head fc2
    p["conf1"] = linear(keys[6], HEAD_HIDDEN, LATENT_DIM)
    p["conf2"] = linear(keys[7], 1, HEAD_HIDDEN)
    p["ret1"] = linear(keys[8], HEAD_HIDDEN, LATENT_DIM)
    p["ret2"] = linear(keys[9], 1, HEAD_HIDDEN)
    p["dec1"] = linear(keys[10], ENC_HIDDEN, LATENT_DIM)  # decoder fc1
    p["dec2"] = linear(keys[11], EXPAND_DIM, ENC_HIDDEN)  # decoder fc2
    return p


def pack_params(p, weight_dtype=jnp.bfloat16):
    """[out,in] torch weights -> fused, lane-padded [in,out] bf16 kernel params."""

    def wt(w, pad_in=0, pad_out=0):
        w = w.T                                            # -> [in, out]
        if pad_in or pad_out:
            w = jnp.pad(w, ((0, pad_in), (0, pad_out)))
        return w.astype(weight_dtype)

    def bias(b, pad=0):
        b = b[None, :]
        if pad:
            b = jnp.pad(b, ((0, 0), (0, pad)))
        return b.astype(jnp.float32)

    epad = EXPAND_PAD - EXPAND_DIM

    exp_w = wt(p["exp"][0], pad_out=epad)                  # [8, 896]
    exp_b = bias(p["exp"][1], epad)

    enc1_w = wt(p["enc1"][0], pad_in=epad)                 # [896, 256] (pad rows = 0)
    enc1_b = bias(p["enc1"][1])

    # fused fc_mu | fc_logvar -> [256, 128]
    mulv = jnp.concatenate([p["mu"][0].T, p["lv"][0].T], axis=1)   # [256, 64]
    mulv_w = jnp.pad(mulv, ((0, 0), (0, STATS_PAD - 2 * LATENT_DIM))
                     ).astype(weight_dtype)
    mulv_b = bias(jnp.concatenate([p["mu"][1], p["lv"][1]]),
                  STATS_PAD - 2 * LATENT_DIM)

    # fused head layer 1 -> [32, 48]
    head1_w = jnp.concatenate(
        [p["pos1"][0].T, p["conf1"][0].T, p["ret1"][0].T], axis=1
    ).astype(weight_dtype)
    head1_b = bias(jnp.concatenate([p["pos1"][1], p["conf1"][1], p["ret1"][1]]))

    # block-diagonal head layer 2 -> [48, 128]; cols 0/1/2 = pos/conf/ret
    head2 = jnp.zeros((3 * HEAD_HIDDEN, HEAD_OUT_PAD), jnp.float32)
    head2 = head2.at[0:HEAD_HIDDEN, 0].set(p["pos2"][0][0])
    head2 = head2.at[HEAD_HIDDEN:2 * HEAD_HIDDEN, 1].set(p["conf2"][0][0])
    head2 = head2.at[2 * HEAD_HIDDEN:3 * HEAD_HIDDEN, 2].set(p["ret2"][0][0])
    head2_w = head2.astype(weight_dtype)
    head2_b = (jnp.zeros((1, HEAD_OUT_PAD), jnp.float32)
               .at[0, 0].set(p["pos2"][1][0])
               .at[0, 1].set(p["conf2"][1][0])
               .at[0, 2].set(p["ret2"][1][0]))

    dec1_w = wt(p["dec1"][0])                              # [32, 256]
    dec1_b = bias(p["dec1"][1])
    dec2_w = wt(p["dec2"][0], pad_out=epad)                # [256, 896]
    dec2_b = bias(p["dec2"][1], epad)

    return (exp_w, exp_b, enc1_w, enc1_b, mulv_w, mulv_b,
            head1_w, head1_b, head2_w, head2_b,
            dec1_w, dec1_b, dec2_w, dec2_b)


# ----------------------------------------------------------------------------
# Pure-JAX f32 reference (mirrors the PyTorch forward) for correctness checks.
# ----------------------------------------------------------------------------

def reference_forward(x, eps, p):
    def lin(h, wb):
        return h @ wb[0].T + wb[1]

    expanded = jax.nn.sigmoid(lin(x, p["exp"]))
    h_enc = jax.nn.relu(lin(expanded, p["enc1"]))
    mean = lin(h_enc, p["mu"])
    logvar = lin(h_enc, p["lv"])
    pos = jnp.tanh(lin(jax.nn.relu(lin(mean, p["pos1"])), p["pos2"]))[:, 0]
    conf = jax.nn.sigmoid(lin(jax.nn.relu(lin(mean, p["conf1"])), p["conf2"]))[:, 0]
    ret = lin(jax.nn.relu(lin(mean, p["ret1"])), p["ret2"])[:, 0]
    z = mean + jnp.exp(0.5 * logvar) * eps
    recon = jax.nn.sigmoid(lin(jax.nn.relu(lin(z, p["dec1"])), p["dec2"]))
    return {"positions": pos, "confidence": conf, "predicted_returns": ret,
            "reconstructed": recon, "original": expanded,
            "mean": mean, "logvar": logvar}


if __name__ == "__main__":
    key = jax.random.PRNGKey(0)
    k_params, k_x, k_eps = jax.random.split(key, 3)

    torch_params = init_torch_style_params(k_params)
    packed = pack_params(torch_params)

    B = 8  # small demo batch; multiple of 8 (f32 sublane tiling)
    x = jax.random.normal(k_x, (B, INPUT_DIM), jnp.float32)
    # eps replaces torch.randn_like(logvar) inside forward (host-side draw).
    eps = jax.random.normal(k_eps, (B, LATENT_DIM), jnp.float32)

    fwd = jax.jit(functools.partial(beta_vae_financial_forward,
                                    packed_params=packed, block_b=256))
    out = fwd(x, eps)
    jax.block_until_ready(out)

    # shape / sanity checks
    assert out["positions"].shape == (B,)
    assert out["confidence"].shape == (B,)
    assert out["predicted_returns"].shape == (B,)
    assert out["reconstructed"].shape == (B, EXPAND_DIM)
    assert out["original"].shape == (B, EXPAND_DIM)
    assert out["mean"].shape == (B, LATENT_DIM)
    assert out["logvar"].shape == (B, LATENT_DIM)
    for v in out.values():
        assert bool(jnp.all(jnp.isfinite(v)))
    assert bool(jnp.all(jnp.abs(out["positions"]) <= 1.0 + 1e-3))      # tanh range
    assert bool(jnp.all((out["confidence"] >= -1e-3)
                        & (out["confidence"] <= 1.0 + 1e-3)))          # sigmoid range

    # numerical cross-check vs pure-JAX f32 reference (loose tolerance: kernel
    # uses bf16 matmul operands and EUP approx reciprocal for sigmoid).
    ref = reference_forward(x, eps, torch_params)
    for name in out:
        diff = float(jnp.max(jnp.abs(out[name] - ref[name])))
        assert diff < 0.1, f"{name} max abs diff {diff}"

    print("KERNEL_OK")
</pallas_src>

<mosaic_0001>
module attributes {stable_mosaic.version = 11 : i64} {
  func.func @_beta_vae_financial_kernel(%arg0: i32, %arg1: memref<8x8xf32, #tpu.memory_space<vmem>>, %arg2: memref<8x32xf32, #tpu.memory_space<vmem>>, %arg3: memref<8x896xbf16, #tpu.memory_space<vmem>>, %arg4: memref<1x896xf32, #tpu.memory_space<vmem>>, %arg5: memref<896x256xbf16, #tpu.memory_space<vmem>>, %arg6: memref<1x256xf32, #tpu.memory_space<vmem>>, %arg7: memref<256x128xbf16, #tpu.memory_space<vmem>>, %arg8: memref<1x128xf32, #tpu.memory_space<vmem>>, %arg9: memref<32x48xbf16, #tpu.memory_space<vmem>>, %arg10: memref<1x48xf32, #tpu.memory_space<vmem>>, %arg11: memref<48x128xbf16, #tpu.memory_space<vmem>>, %arg12: memref<1x128xf32, #tpu.memory_space<vmem>>, %arg13: memref<32x256xbf16, #tpu.memory_space<vmem>>, %arg14: memref<1x256xf32, #tpu.memory_space<vmem>>, %arg15: memref<256x896xbf16, #tpu.memory_space<vmem>>, %arg16: memref<1x896xf32, #tpu.memory_space<vmem>>, %arg17: memref<8x128xf32, #tpu.memory_space<vmem>>, %arg18: memref<8x896xf32, #tpu.memory_space<vmem>>, %arg19: memref<8x896xf32, #tpu.memory_space<vmem>>, %arg20: memref<8x128xf32, #tpu.memory_space<vmem>>) attributes {dimension_semantics = [#tpu.dimension_semantics<parallel>], iteration_bounds = array<i64: 1>, scalar_prefetch = 0 : i64, scratch_operands = 0 : i64, tpu.core_type = #tpu.core_type<tc>, window_params = [{transform_indices = @transform_0, window_bounds = array<i64: 8, 8>}, {transform_indices = @transform_1, window_bounds = array<i64: 8, 32>}, {pipeline_mode = #tpu.pipeline_mode<synchronous>, transform_indices = @transform_2, window_bounds = array<i64: 8, 896>}, {pipeline_mode = #tpu.pipeline_mode<synchronous>, transform_indices = @transform_3, window_bounds = array<i64: 1, 896>}, {pipeline_mode = #tpu.pipeline_mode<synchronous>, transform_indices = @transform_4, window_bounds = array<i64: 896, 256>}, {pipeline_mode = #tpu.pipeline_mode<synchronous>, transform_indices = @transform_5, window_bounds = array<i64: 1, 256>}, {pipeline_mode = #tpu.pipeline_mode<synchronous>, transform_indices = @transform_6, window_bounds = array<i64: 256, 128>}, {pipeline_mode = #tpu.pipeline_mode<synchronous>, transform_indices = @transform_7, window_bounds = array<i64: 1, 128>}, {pipeline_mode = #tpu.pipeline_mode<synchronous>, transform_indices = @transform_8, window_bounds = array<i64: 32, 48>}, {pipeline_mode = #tpu.pipeline_mode<synchronous>, transform_indices = @transform_9, window_bounds = array<i64: 1, 48>}, {pipeline_mode = #tpu.pipeline_mode<synchronous>, transform_indices = @transform_10, window_bounds = array<i64: 48, 128>}, {pipeline_mode = #tpu.pipeline_mode<synchronous>, transform_indices = @transform_11, window_bounds = array<i64: 1, 128>}, {pipeline_mode = #tpu.pipeline_mode<synchronous>, transform_indices = @transform_12, window_bounds = array<i64: 32, 256>}, {pipeline_mode = #tpu.pipeline_mode<synchronous>, transform_indices = @transform_13, window_bounds = array<i64: 1, 256>}, {pipeline_mode = #tpu.pipeline_mode<synchronous>, transform_indices = @transform_14, window_bounds = array<i64: 256, 896>}, {pipeline_mode = #tpu.pipeline_mode<synchronous>, transform_indices = @transform_15, window_bounds = array<i64: 1, 896>}, {transform_indices = @transform_16, window_bounds = array<i64: 8, 128>}, {transform_indices = @transform_17, window_bounds = array<i64: 8, 896>}, {transform_indices = @transform_18, window_bounds = array<i64: 8, 896>}, {transform_indices = @transform_19, window_bounds = array<i64: 8, 128>}]} {
    %c0 = arith.constant 0 : index
    %c0_0 = arith.constant 0 : index
    %0 = vector.load %arg1[%c0, %c0_0] : memref<8x8xf32, #tpu.memory_space<vmem>>, vector<8x8xf32>
    %1 = arith.truncf %0 : vector<8x8xf32> to vector<8x8xbf16>
    %c0_1 = arith.constant 0 : index
    %c0_2 = arith.constant 0 : index
    %2 = vector.load %arg3[%c0_1, %c0_2] : memref<8x896xbf16, #tpu.memory_space<vmem>>, vector<8x896xbf16>
    %cst = arith.constant dense<0.000000e+00> : vector<8x896xf32>
    %3 = tpu.matmul %1, %2, %cst {dimension_numbers = #tpu.dot_dimension_numbers<[1], [0], [0], [1], [0, 0, 1, 1], [], []>} : vector<8x8xbf16>, vector<8x896xbf16>, vector<8x896xf32> -> vector<8x896xf32>
    %c0_3 = arith.constant 0 : index
    %c0_4 = arith.constant 0 : index
    %4 = vector.load %arg4[%c0_3, %c0_4] : memref<1x896xf32, #tpu.memory_space<vmem>>, vector<1x896xf32>
    %5 = vector.broadcast %4 : vector<1x896xf32> to vector<8x896xf32>
    %6 = arith.addf %3, %5 : vector<8x896xf32>
    %cst_5 = arith.constant 0.000000e+00 : f32
    %7 = vector.broadcast %cst_5 : f32 to vector<8x896xf32>
    %8 = arith.subf %7, %6 : vector<8x896xf32>
    %9 = math.exp %8 : vector<8x896xf32>
    %cst_6 = arith.constant 1.000000e+00 : f32
    %10 = vector.broadcast %cst_6 : f32 to vector<8x896xf32>
    %11 = arith.addf %10, %9 : vector<8x896xf32>
    %12 = tpu.reciprocal %11 {approx = true} : vector<8x896xf32> -> vector<8x896xf32>
    %c0_7 = arith.constant 0 : index
    %c0_8 = arith.constant 0 : index
    %13 = vector.load %arg19[%c0_7, %c0_8] : memref<8x896xf32, #tpu.memory_space<vmem>>, vector<8x896xf32>
    tpu.vector_store %arg19[%c0_7, %c0_8], %12 {strides = array<i32>} : memref<8x896xf32, #tpu.memory_space<vmem>>, vector<8x896xf32>,
    %14 = arith.truncf %12 : vector<8x896xf32> to vector<8x896xbf16>
    %c0_9 = arith.constant 0 : index
    %c0_10 = arith.constant 0 : index
    %15 = vector.load %arg5[%c0_9, %c0_10] : memref<896x256xbf16, #tpu.memory_space<vmem>>, vector<896x256xbf16>
    %cst_11 = arith.constant dense<0.000000e+00> : vector<8x256xf32>
    %16 = tpu.matmul %14, %15, %cst_11 {dimension_numbers = #tpu.dot_dimension_numbers<[1], [0], [0], [1], [0, 0, 1, 1], [], []>} : vector<8x896xbf16>, vector<896x256xbf16>, vector<8x256xf32> -> vector<8x256xf32>
    %c0_12 = arith.constant 0 : index
    %c0_13 = arith.constant 0 : index
    %17 = vector.load %arg6[%c0_12, %c0_13] : memref<1x256xf32, #tpu.memory_space<vmem>>, vector<1x256xf32>
    %18 = vector.broadcast %17 : vector<1x256xf32> to vector<8x256xf32>
    %19 = arith.addf %16, %18 : vector<8x256xf32>
    %cst_14 = arith.constant 0.000000e+00 : f32
    %20 = vector.broadcast %cst_14 : f32 to vector<8x256xf32>
    %21 = arith.maximumf %19, %20 : vector<8x256xf32>
    %22 = arith.truncf %21 : vector<8x256xf32> to vector<8x256xbf16>
    %c0_15 = arith.constant 0 : index
    %c0_16 = arith.constant 0 : index
    %23 = vector.load %arg7[%c0_15, %c0_16] : memref<256x128xbf16, #tpu.memory_space<vmem>>, vector<256x128xbf16>
    %cst_17 = arith.constant dense<0.000000e+00> : vector<8x128xf32>
    %24 = tpu.matmul %22, %23, %cst_17 {dimension_numbers = #tpu.dot_dimension_numbers<[1], [0], [0], [1], [0, 0, 1, 1], [], []>} : vector<8x256xbf16>, vector<256x128xbf16>, vector<8x128xf32> -> vector<8x128xf32>
    %c0_18 = arith.constant 0 : index
    %c0_19 = arith.constant 0 : index
    %25 = vector.load %arg8[%c0_18, %c0_19] : memref<1x128xf32, #tpu.memory_space<vmem>>, vector<1x128xf32>
    %26 = vector.broadcast %25 : vector<1x128xf32> to vector<8x128xf32>
    %27 = arith.addf %24, %26 : vector<8x128xf32>
    %c0_20 = arith.constant 0 : index
    %c0_21 = arith.constant 0 : index
    %28 = vector.load %arg20[%c0_20, %c0_21] : memref<8x128xf32, #tpu.memory_space<vmem>>, vector<8x128xf32>
    tpu.vector_store %arg20[%c0_20, %c0_21], %27 {strides = array<i32>} : memref<8x128xf32, #tpu.memory_space<vmem>>, vector<8x128xf32>,
    %29 = vector.extract_strided_slice %27 {offsets = [0, 0], sizes = [8, 32], strides = [1, 1]} : vector<8x128xf32> to vector<8x32xf32>
    %30 = vector.extract_strided_slice %27 {offsets = [0, 32], sizes = [8, 32], strides = [1, 1]} : vector<8x128xf32> to vector<8x32xf32>
    %31 = arith.truncf %29 : vector<8x32xf32> to vector<8x32xbf16>
    %c0_22 = arith.constant 0 : index
    %c0_23 = arith.constant 0 : index
    %32 = vector.load %arg9[%c0_22, %c0_23] : memref<32x48xbf16, #tpu.memory_space<vmem>>, vector<32x48xbf16>
    %cst_24 = arith.constant dense<0.000000e+00> : vector<8x48xf32>
    %33 = tpu.matmul %31, %32, %cst_24 {dimension_numbers = #tpu.dot_dimension_numbers<[1], [0], [0], [1], [0, 0, 1, 1], [], []>} : vector<8x32xbf16>, vector<32x48xbf16>, vector<8x48xf32> -> vector<8x48xf32>
    %c0_25 = arith.constant 0 : index
    %c0_26 = arith.constant 0 : index
    %34 = vector.load %arg10[%c0_25, %c0_26] : memref<1x48xf32, #tpu.memory_space<vmem>>, vector<1x48xf32>
    %35 = vector.broadcast %34 : vector<1x48xf32> to vector<8x48xf32>
    %36 = arith.addf %33, %35 : vector<8x48xf32>
    %cst_27 = arith.constant 0.000000e+00 : f32
    %37 = vector.broadcast %cst_27 : f32 to vector<8x48xf32>
    %38 = arith.maximumf %36, %37 : vector<8x48xf32>
    %39 = arith.truncf %38 : vector<8x48xf32> to vector<8x48xbf16>
    %c0_28 = arith.constant 0 : index
    %c0_29 = arith.constant 0 : index
    %40 = vector.load %arg11[%c0_28, %c0_29] : memref<48x128xbf16, #tpu.memory_space<vmem>>, vector<48x128xbf16>
    %cst_30 = arith.constant dense<0.000000e+00> : vector<8x128xf32>
    %41 = tpu.matmul %39, %40, %cst_30 {dimension_numbers = #tpu.dot_dimension_numbers<[1], [0], [0], [1], [0, 0, 1, 1], [], []>} : vector<8x48xbf16>, vector<48x128xbf16>, vector<8x128xf32> -> vector<8x128xf32>
    %c0_31 = arith.constant 0 : index
    %c0_32 = arith.constant 0 : index
    %42 = vector.load %arg12[%c0_31, %c0_32] : memref<1x128xf32, #tpu.memory_space<vmem>>, vector<1x128xf32>
    %43 = vector.broadcast %42 : vector<1x128xf32> to vector<8x128xf32>
    %44 = arith.addf %41, %43 : vector<8x128xf32>
    %45 = tpu.iota {dimensions = array<i32: 1>} : vector<8x128xi32>
    %c0_i32 = arith.constant 0 : i32
    %46 = vector.broadcast %c0_i32 : i32 to vector<8x128xi32>
    %47 = arith.cmpi eq, %45, %46 : vector<8x128xi32>
    %48 = math.tanh %44 : vector<8x128xf32>
    %c1_i32 = arith.constant 1 : i32
    %49 = vector.broadcast %c1_i32 : i32 to vector<8x128xi32>
    %50 = arith.cmpi eq, %45, %49 : vector<8x128xi32>
    %cst_33 = arith.constant 0.000000e+00 : f32
    %51 = vector.broadcast %cst_33 : f32 to vector<8x128xf32>
    %52 = arith.subf %51, %44 : vector<8x128xf32>
    %53 = math.exp %52 : vector<8x128xf32>
    %cst_34 = arith.constant 1.000000e+00 : f32
    %54 = vector.broadcast %cst_34 : f32 to vector<8x128xf32>
    %55 = arith.addf %54, %53 : vector<8x128xf32>
    %56 = tpu.reciprocal %55 {approx = true} : vector<8x128xf32> -> vector<8x128xf32>
    %57 = arith.select %50, %56, %44 : vector<8x128xi1>, vector<8x128xf32>
    %58 = arith.select %47, %48, %57 : vector<8x128xi1>, vector<8x128xf32>
    %c0_35 = arith.constant 0 : index
    %c0_36 = arith.constant 0 : index
    %59 = vector.load %arg17[%c0_35, %c0_36] : memref<8x128xf32, #tpu.memory_space<vmem>>, vector<8x128xf32>
    tpu.vector_store %arg17[%c0_35, %c0_36], %58 {strides = array<i32>} : memref<8x128xf32, #tpu.memory_space<vmem>>, vector<8x128xf32>,
    %cst_37 = arith.constant 5.000000e-01 : f32
    %60 = vector.broadcast %cst_37 : f32 to vector<8x32xf32>
    %61 = arith.mulf %60, %30 : vector<8x32xf32>
    %62 = math.exp %61 : vector<8x32xf32>
    %c0_38 = arith.constant 0 : index
    %c0_39 = arith.constant 0 : index
    %63 = vector.load %arg2[%c0_38, %c0_39] : memref<8x32xf32, #tpu.memory_space<vmem>>, vector<8x32xf32>
    %64 = arith.mulf %62, %63 : vector<8x32xf32>
    %65 = arith.addf %29, %64 : vector<8x32xf32>
    %66 = arith.truncf %65 : vector<8x32xf32> to vector<8x32xbf16>
    %c0_40 = arith.constant 0 : index
    %c0_41 = arith.constant 0 : index
    %67 = vector.load %arg13[%c0_40, %c0_41] : memref<32x256xbf16, #tpu.memory_space<vmem>>, vector<32x256xbf16>
    %cst_42 = arith.constant dense<0.000000e+00> : vector<8x256xf32>
    %68 = tpu.matmul %66, %67, %cst_42 {dimension_numbers = #tpu.dot_dimension_numbers<[1], [0], [0], [1], [0, 0, 1, 1], [], []>} : vector<8x32xbf16>, vector<32x256xbf16>, vector<8x256xf32> -> vector<8x256xf32>
    %c0_43 = arith.constant 0 : index
    %c0_44 = arith.constant 0 : index
    %69 = vector.load %arg14[%c0_43, %c0_44] : memref<1x256xf32, #tpu.memory_space<vmem>>, vector<1x256xf32>
    %70 = vector.broadcast %69 : vector<1x256xf32> to vector<8x256xf32>
    %71 = arith.addf %68, %70 : vector<8x256xf32>
    %cst_45 = arith.constant 0.000000e+00 : f32
    %72 = vector.broadcast %cst_45 : f32 to vector<8x256xf32>
    %73 = arith.maximumf %71, %72 : vector<8x256xf32>
    %74 = arith.truncf %73 : vector<8x256xf32> to vector<8x256xbf16>
    %c0_46 = arith.constant 0 : index
    %c0_47 = arith.constant 0 : index
    %75 = vector.load %arg15[%c0_46, %c0_47] : memref<256x896xbf16, #tpu.memory_space<vmem>>, vector<256x896xbf16>
    %cst_48 = arith.constant dense<0.000000e+00> : vector<8x896xf32>
    %76 = tpu.matmul %74, %75, %cst_48 {dimension_numbers = #tpu.dot_dimension_numbers<[1], [0], [0], [1], [0, 0, 1, 1], [], []>} : vector<8x256xbf16>, vector<256x896xbf16>, vector<8x896xf32> -> vector<8x896xf32>
    %c0_49 = arith.constant 0 : index
    %c0_50 = arith.constant 0 : index
    %77 = vector.load %arg16[%c0_49, %c0_50] : memref<1x896xf32, #tpu.memory_space<vmem>>, vector<1x896xf32>
    %78 = vector.broadcast %77 : vector<1x896xf32> to vector<8x896xf32>
    %79 = arith.addf %76, %78 : vector<8x896xf32>
    %cst_51 = arith.constant 0.000000e+00 : f32
    %80 = vector.broadcast %cst_51 : f32 to vector<8x896xf32>
    %81 = arith.subf %80, %79 : vector<8x896xf32>
    %82 = math.exp %81 : vector<8x896xf32>
    %cst_52 = arith.constant 1.000000e+00 : f32
    %83 = vector.broadcast %cst_52 : f32 to vector<8x896xf32>
    %84 = arith.addf %83, %82 : vector<8x896xf32>
    %85 = tpu.reciprocal %84 {approx = true} : vector<8x896xf32> -> vector<8x896xf32>
    %c0_53 = arith.constant 0 : index
    %c0_54 = arith.constant 0 : index
    %86 = vector.load %arg18[%c0_53, %c0_54] : memref<8x896xf32, #tpu.memory_space<vmem>>, vector<8x896xf32>
    tpu.vector_store %arg18[%c0_53, %c0_54], %85 {strides = array<i32>} : memref<8x896xf32, #tpu.memory_space<vmem>>, vector<8x896xf32>,
    return
  }
  func.func @transform_0(%arg0: i32) -> (i32, i32) {
    %c0_i32 = arith.constant 0 : i32
    %c0_i32_0 = arith.constant 0 : i32
    return %arg0, %c0_i32 : i32, i32
  }
  func.func @transform_1(%arg0: i32) -> (i32, i32) {
    %c0_i32 = arith.constant 0 : i32
    %c0_i32_0 = arith.constant 0 : i32
    return %arg0, %c0_i32 : i32, i32
  }
  func.func @transform_2(%arg0: i32) -> (i32, i32) {
    %c0_i32 = arith.constant 0 : i32
    %c0_i32_0 = arith.constant 0 : i32
    %c0_i32_1 = arith.constant 0 : i32
    return %c0_i32, %c0_i32_0 : i32, i32
  }
  func.func @transform_3(%arg0: i32) -> (i32, i32) {
    %c0_i32 = arith.constant 0 : i32
    %c0_i32_0 = arith.constant 0 : i32
    %c0_i32_1 = arith.constant 0 : i32
    return %c0_i32, %c0_i32_0 : i32, i32
  }
  func.func @transform_4(%arg0: i32) -> (i32, i32) {
    %c0_i32 = arith.constant 0 : i32
    %c0_i32_0 = arith.constant 0 : i32
    %c0_i32_1 = arith.constant 0 : i32
    return %c0_i32, %c0_i32_0 : i32, i32
  }
  func.func @transform_5(%arg0: i32) -> (i32, i32) {
    %c0_i32 = arith.constant 0 : i32
    %c0_i32_0 = arith.constant 0 : i32
    %c0_i32_1 = arith.constant 0 : i32
    return %c0_i32, %c0_i32_0 : i32, i32
  }
  func.func @transform_6(%arg0: i32) -> (i32, i32) {
    %c0_i32 = arith.constant 0 : i32
    %c0_i32_0 = arith.constant 0 : i32
    %c0_i32_1 = arith.constant 0 : i32
    return %c0_i32, %c0_i32_0 : i32, i32
  }
  func.func @transform_7(%arg0: i32) -> (i32, i32) {
    %c0_i32 = arith.constant 0 : i32
    %c0_i32_0 = arith.constant 0 : i32
    %c0_i32_1 = arith.constant 0 : i32
    return %c0_i32, %c0_i32_0 : i32, i32
  }
  func.func @transform_8(%arg0: i32) -> (i32, i32) {
    %c0_i32 = arith.constant 0 : i32
    %c0_i32_0 = arith.constant 0 : i32
    %c0_i32_1 = arith.constant 0 : i32
    return %c0_i32, %c0_i32_0 : i32, i32
  }
  func.func @transform_9(%arg0: i32) -> (i32, i32) {
    %c0_i32 = arith.constant 0 : i32
    %c0_i32_0 = arith.constant 0 : i32
    %c0_i32_1 = arith.constant 0 : i32
    return %c0_i32, %c0_i32_0 : i32, i32
  }
  func.func @transform_10(%arg0: i32) -> (i32, i32) {
    %c0_i32 = arith.constant 0 : i32
    %c0_i32_0 = arith.constant 0 : i32
    %c0_i32_1 = arith.constant 0 : i32
    return %c0_i32, %c0_i32_0 : i32, i32
  }
  func.func @transform_11(%arg0: i32) -> (i32, i32) {
    %c0_i32 = arith.constant 0 : i32
    %c0_i32_0 = arith.constant 0 : i32
    %c0_i32_1 = arith.constant 0 : i32
    return %c0_i32, %c0_i32_0 : i32, i32
  }
  func.func @transform_12(%arg0: i32) -> (i32, i32) {
    %c0_i32 = arith.constant 0 : i32
    %c0_i32_0 = arith.constant 0 : i32
    %c0_i32_1 = arith.constant 0 : i32
    return %c0_i32, %c0_i32_0 : i32, i32
  }
  func.func @transform_13(%arg0: i32) -> (i32, i32) {
    %c0_i32 = arith.constant 0 : i32
    %c0_i32_0 = arith.constant 0 : i32
    %c0_i32_1 = arith.constant 0 : i32
    return %c0_i32, %c0_i32_0 : i32, i32
  }
  func.func @transform_14(%arg0: i32) -> (i32, i32) {
    %c0_i32 = arith.constant 0 : i32
    %c0_i32_0 = arith.constant 0 : i32
    %c0_i32_1 = arith.constant 0 : i32
    return %c0_i32, %c0_i32_0 : i32, i32
  }
  func.func @transform_15(%arg0: i32) -> (i32, i32) {
    %c0_i32 = arith.constant 0 : i32
    %c0_i32_0 = arith.constant 0 : i32
    %c0_i32_1 = arith.constant 0 : i32
    return %c0_i32, %c0_i32_0 : i32, i32
  }
  func.func @transform_16(%arg0: i32) -> (i32, i32) {
    %c0_i32 = arith.constant 0 : i32
    %c0_i32_0 = arith.constant 0 : i32
    return %arg0, %c0_i32 : i32, i32
  }
  func.func @transform_17(%arg0: i32) -> (i32, i32) {
    %c0_i32 = arith.constant 0 : i32
    %c0_i32_0 = arith.constant 0 : i32
    return %arg0, %c0_i32 : i32, i32
  }
  func.func @transform_18(%arg0: i32) -> (i32, i32) {
    %c0_i32 = arith.constant 0 : i32
    %c0_i32_0 = arith.constant 0 : i32
    return %arg0, %c0_i32 : i32, i32
  }
  func.func @transform_19(%arg0: i32) -> (i32, i32) {
    %c0_i32 = arith.constant 0 : i32
    %c0_i32_0 = arith.constant 0 : i32
    return %arg0, %c0_i32 : i32, i32
  }
}

</mosaic_0001>

<bundles_post_ra>
// kernel: beta_vae_financial_forward.1
= control target key start
LH: loop header
LB: loop body
LE: loop exit
PB: predicated region body
PF: predicated region fallthrough
CT: control target
= control target key end

     0   :  { %s4113_s0 = inlined_call_operand.hbm [shape: f32[8,8], index: 0, kind: input, shape index: {}]   ;;  %s4114_s1 = inlined_call_operand.hbm [shape: f32[8,32], index: 1, kind: input, shape index: {}]   ;;  %s4115_s2 = inlined_call_operand.hbm [shape: bf16[8,896], index: 2, kind: input, shape index: {}]   ;;  %s4116_s3 = inlined_call_operand.hbm [shape: f32[1,896], index: 3, kind: input, shape index: {}]   ;;  %s4117_s4 = inlined_call_operand.hbm [shape: bf16[896,256], index: 4, kind: input, shape index: {}]   ;;  %s4118_s5 = inlined_call_operand.vmem [shape: f32[1,256], index: 5, kind: input, shape index: {}]   ;;  %s4119_s6 = inlined_call_operand.hbm [shape: bf16[256,128], index: 6, kind: input, shape index: {}]   ;;  %s4120_s7 = inlined_call_operand.vmem [shape: f32[1,128], index: 7, kind: input, shape index: {}]   ;;  %s4121_s8 = inlined_call_operand.hbm [shape: bf16[32,48], index: 8, kind: input, shape index: {}]   ;;  %s4122_s9 = inlined_call_operand.vmem [shape: f32[1,48], index: 9, kind: input, shape index: {}]   ;;  %s4123_s10 = inlined_call_operand.hbm [shape: bf16[48,128], index: 10, kind: input, shape index: {}]   ;;  %s4124_s11 = inlined_call_operand.vmem [shape: f32[1,128], index: 11, kind: input, shape index: {}]   ;;  %s4125_s12 = inlined_call_operand.hbm [shape: bf16[32,256], index: 12, kind: input, shape index: {}]   ;;  %s4126_s13 = inlined_call_operand.vmem [shape: f32[1,256], index: 13, kind: input, shape index: {}]   ;;  %s4127_s14 = inlined_call_operand.hbm [shape: bf16[256,896], index: 14, kind: input, shape index: {}]   ;;  %s4128_s15 = inlined_call_operand.vmem [shape: f32[1,896], index: 15, kind: input, shape index: {}]   ;;  %s4129_s16 = inlined_call_operand.vmem [shape: f32[8,128], index: 16, kind: output, shape index: {0}]   ;;  %s4130_s17 = inlined_call_operand.hbm [shape: f32[8,896], index: 17, kind: output, shape index: {1}]   ;;  %s4131_s18 = inlined_call_operand.hbm [shape: f32[8,896], index: 18, kind: output, shape index: {2}]   ;;  %s4132_s19 = inlined_call_operand.vmem [shape: f32[8,128], index: 19, kind: output, shape index: {3}]  }
   0x1   :  { %4133 = sst [smem:[#allocation30_spill]] %s4113_s0 }
   0x2   :  { %4134 = sst [smem:[#allocation31_spill]] %s4114_s1 }
   0x3   :  { %4135 = sst [smem:[#allocation32_spill]] %s4115_s2 }
   0x4   :  { %4136 = sst [smem:[#allocation33_spill]] %s4116_s3 }
   0x5   :  { %25 = vsyncpa [#allocation3], 0 }
   0x6   :  { %26 = vsyncpa [#allocation6], 0 }
   0x7   :  { %27 = vsyncpa [#allocation9], 0 }
   0x8   :  { %28 = vsyncpa [#allocation12], 0 }
   0x9   :  { %29 = vsyncpa [#allocation15], 0 }
   0xa   :  { %30 = vsyncpa [#allocation18], 0 }
   0xb   :  { %31 = vsyncpa [#allocation4], 0 }
   0xc   :  { %32 = vsyncpa [#allocation21], 0  ;;  %s3811_s0 = smov [#allocation5]   ;;  %s3812_s20 = smov [#allocation8]  }
   0xd   :  { %s49_s30 = sshll.u32 %s3811_s0, 4  ;;  %s69_s21 = sshll.u32 %s3812_s20, 4  ;;  %s50_s30 = int_to_ptr.vmem [resolvable:$true] %s49_s30  ;;  %s70_s21 = int_to_ptr.vmem [resolvable:$true] %s69_s21 }
   0xe   :  { %s3563_s1 = scalar_lea.vmem %s50_s30, 128  ;;  %p3568_p1 = scmp.lt.s32.totalorder %s50_s30, %s50_s30 }
   0xf   :  { %p3564_p0 = scmp.ne.s32.totalorder %s50_s30, %s3563_s1  ;;  %p3569_p2 = scmp.lt.s32.totalorder %s3563_s1, %s3563_s1 }
  0x11   :  { %p3570_p3 = por %p3569_p2, %p3568_p1 }
  0x13   :  { %p3571_p4 = pnand %p3570_p3, %p3564_p0 }
  0x15   :  { %3574 = shalt.err (!%p3571_p4)
}
  0x16   :  { %s4137_s23 = sld [smem:[#allocation31_spill]]  ;;  %s3583_s24 = scalar_lea.vmem %s70_s21, 112 }
  0x17   :  { %p3584_p5 = scmp.ne.s32.totalorder %s70_s21, %s3583_s24  ;;  %s3587_s25 = scalar_lea.vmem %s70_s21, 128 }
  0x18   :  { %p3588_p6 = scmp.lt.s32.totalorder %s70_s21, %s70_s21  ;;  %p3589_p7 = scmp.lt.s32.totalorder %s3587_s25, %s3583_s24 }
  0x1a   :  { %p3590_p8 = por %p3589_p7, %p3588_p6 }
  0x1c   :  { %52 = dma.hbm_to_vmem [thread:$0]  %s4137_s23, 128, %s50_s30, [#allocation6]  }
  0x1d   :  { %p3591_p9 = pnand %p3590_p8, %p3584_p5 }
  0x1f   :  { %3594 = shalt.err (!%p3591_p9)
}
  0x20   :  { %s4138_s27 = sld [smem:[#allocation33_spill]]  ;;  %s3813_s28 = smov [#allocation11]  }
  0x21   :  { %s92_s29 = sshll.u32 %s3813_s28, 4  ;;  %s93_s29 = int_to_ptr.vmem [resolvable:$true] %s92_s29 }
  0x22   :  { %s3603_s0 = scalar_lea.vmem %s93_s29, 2048  ;;  %p3608_p11 = scmp.lt.s32.totalorder %s93_s29, %s93_s29 }
  0x23   :  { %p3604_p10 = scmp.ne.s32.totalorder %s93_s29, %s3603_s0  ;;  %p3609_p12 = scmp.lt.s32.totalorder %s3603_s0, %s3603_s0 }
  0x25   :  { %p3610_p13 = por %p3609_p12, %p3608_p11 }
  0x26   :  { %72 = dma.hbm_to_vmem [thread:$0]  %s4138_s27, 112, %s70_s21, [#allocation9]  }
  0x27   :  { %p3611_p0 = pnand %p3610_p13, %p3604_p10 }
  0x29   :  { %3614 = shalt.err (!%p3611_p0)
}
  0x2a   :  { %s3814_s30 = smov 64   ;;  %s3815_s20 = smov 4  }
  0x2b   :  { %98 = dma.hbm_to_vmem [thread:$0]  %s4119_s6, 2048, %s93_s29, [#allocation12], %s3814_s30, %s3814_s30, %s3815_s20  }
  0x2c   :  { %s3816_s21 = smov [#allocation14]   ;;  %s3817_s23 = smov [#allocation2]  }
  0x2d   :  { %s120_s2 = sshll.u32 %s3816_s21, 4  ;;  %s39_s24 = sshll.u32 %s3817_s23, 4  ;;  %s121_s2 = int_to_ptr.vmem [resolvable:$true] %s120_s2  ;;  %s40_s24 = int_to_ptr.vmem [resolvable:$true] %s39_s24 }
  0x2e   :  { %s3623_s25 = scalar_lea.vmem %s121_s2, 384  ;;  %p3628_p2 = scmp.lt.s32.totalorder %s121_s2, %s121_s2 }
  0x2f   :  { %p3624_p1 = scmp.ne.s32.totalorder %s121_s2, %s3623_s25  ;;  %p3629_p3 = scmp.lt.s32.totalorder %s3623_s25, %s3623_s25 }
  0x31   :  { %p3630_p4 = por %p3629_p3, %p3628_p2 }
  0x33   :  { %p3631_p5 = pnand %p3630_p4, %p3624_p1 }
  0x35   :  { %3634 = shalt.err (!%p3631_p5)
}
  0x36   :  { %126 = dma.hbm_to_vmem [thread:$0]  %s4123_s10, 384, %s121_s2, [#allocation15], %s3814_s30, %s3814_s30, %s3815_s20  }
  0x37   :  { %s3643_s6 = scalar_lea.vmem %s40_s24, 128  ;;  %p3648_p7 = scmp.lt.s32.totalorder %s40_s24, %s40_s24 }
  0x38   :  { %p3644_p6 = scmp.ne.s32.totalorder %s40_s24, %s3643_s6  ;;  %p3649_p8 = scmp.lt.s32.totalorder %s3643_s6, %s3643_s6 }
  0x3a   :  { %p3650_p9 = por %p3649_p8, %p3648_p7 }
  0x3c   :  { %p3651_p10 = pnand %p3650_p9, %p3644_p6 }
  0x3e   :  { %3654 = shalt.err (!%p3651_p10)
}
  0x3f   :  { %s4139_s29 = sld [smem:[#allocation30_spill]]  ;;  %s3818_s0 = smov [#allocation7]  }
  0x40   :  { %s59_s1 = sshll.u32 %s3818_s0, 4  ;;  %s3819_s22 = smov [#allocation10]   ;;  %s60_s1 = int_to_ptr.vmem [resolvable:$true] %s59_s1 }
  0x41   :  { %s78_s21 = sshll.u32 %s3819_s22, 4  ;;  %s3663_s23 = scalar_lea.vmem %s60_s1, 448  ;;  %s79_s21 = int_to_ptr.vmem [resolvable:$true] %s78_s21 }
  0x42   :  { %p3664_p11 = scmp.ne.s32.totalorder %s60_s1, %s3663_s23  ;;  %p3668_p12 = scmp.lt.s32.totalorder %s60_s1, %s60_s1 }
  0x43   :  { %p3669_p13 = scmp.lt.s32.totalorder %s3663_s23, %s3663_s23 }
  0x45   :  { %42 = dma.hbm_to_vmem [thread:$0]  %s4139_s29, 128, %s40_s24, [#allocation3]  }
  0x46   :  { %p3670_p0 = por %p3669_p13, %p3668_p12 }
  0x48   :  { %p3671_p1 = pnand %p3670_p0, %p3664_p11 }
  0x4a   :  { %3674 = shalt.err (!%p3671_p1)
}
  0x4b   :  { %s4140_s25 = sld [smem:[#allocation32_spill]]  ;;  %s3683_s3 = scalar_lea.vmem %s79_s21, 14336 }
  0x4c   :  { %p3684_p2 = scmp.ne.s32.totalorder %s79_s21, %s3683_s3  ;;  %p3688_p3 = scmp.lt.s32.totalorder %s79_s21, %s79_s21 }
  0x4d   :  { %p3689_p4 = scmp.lt.s32.totalorder %s3683_s3, %s3683_s3 }
  0x4f   :  { %p3690_p5 = por %p3689_p4, %p3688_p3 }
  0x51   :  { %62 = dma.hbm_to_vmem [thread:$0]  %s4140_s25, 448, %s60_s1, [#allocation6]  }
  0x52   :  { %p3691_p6 = pnand %p3690_p5, %p3684_p2 }
  0x54   :  { %3694 = shalt.err (!%p3691_p6)
}
  0x55   :  { %s3820_s24 = smov 128   ;;  %s3821_s26 = smov 8  }
  0x56   :  { %84 = dma.hbm_to_vmem [thread:$0]  %s4117_s4, 14336, %s79_s21, [#allocation9], %s3820_s24, %s3820_s24, %s3821_s26  }
  0x57   :  { %s3822_s28 = smov [#allocation13]   ;;  %s3823_s0 = smov [#allocation16]  }
  0x58   :  { %s106_s29 = sshll.u32 %s3822_s28, 4  ;;  %s134_s22 = sshll.u32 %s3823_s0, 4  ;;  %s107_s29 = int_to_ptr.vmem [resolvable:$true] %s106_s29  ;;  %s135_s22 = int_to_ptr.vmem [resolvable:$true] %s134_s22 }
  0x59   :  { %s3703_s1 = scalar_lea.vmem %s107_s29, 256  ;;  %p3708_p8 = scmp.lt.s32.totalorder %s107_s29, %s107_s29 }
  0x5a   :  { %p3704_p7 = scmp.ne.s32.totalorder %s107_s29, %s3703_s1  ;;  %p3709_p9 = scmp.lt.s32.totalorder %s3703_s1, %s3703_s1 }
  0x5c   :  { %p3710_p10 = por %p3709_p9, %p3708_p8 }
  0x5e   :  { %p3711_p11 = pnand %p3710_p10, %p3704_p7 }
  0x60   :  { %3714 = shalt.err (!%p3711_p11)
}
  0x61   :  { %112 = dma.hbm_to_vmem [thread:$0]  %s4121_s8, 256, %s107_s29, [#allocation12], %s3814_s30, %s3814_s30, %s3815_s20  }
  0x62   :  { %s3723_s4 = scalar_lea.vmem %s135_s22, 512  ;;  %p3728_p13 = scmp.lt.s32.totalorder %s135_s22, %s135_s22 }
  0x63   :  { %p3724_p12 = scmp.ne.s32.totalorder %s135_s22, %s3723_s4  ;;  %p3729_p0 = scmp.lt.s32.totalorder %s3723_s4, %s3723_s4 }
  0x65   :  { %p3730_p1 = por %p3729_p0, %p3728_p13 }
  0x67   :  { %p3731_p2 = pnand %p3730_p1, %p3724_p12 }
  0x69   :  { %3734 = shalt.err (!%p3731_p2)
}
  0x6a   :  { %140 = dma.hbm_to_vmem [thread:$0]  %s4125_s12, 512, %s135_s22, [#allocation15], %s3820_s24, %s3820_s24, %s3821_s26  }
  0x6b   :  { %s3824_s25 = smov [#allocation17]  }
  0x6c   :  { %s148_s3 = sshll.u32 %s3824_s25, 4  ;;  %s149_s3 = int_to_ptr.vmem [resolvable:$true] %s148_s3 }
  0x6d   :  { %s3743_s6 = scalar_lea.vmem %s149_s3, 14336  ;;  %p3748_p4 = scmp.lt.s32.totalorder %s149_s3, %s149_s3 }
  0x6e   :  { %p3744_p3 = scmp.ne.s32.totalorder %s149_s3, %s3743_s6  ;;  %p3749_p5 = scmp.lt.s32.totalorder %s3743_s6, %s3743_s6 }
  0x70   :  { %p3750_p6 = por %p3749_p5, %p3748_p4 }
  0x72   :  { %p3751_p7 = pnand %p3750_p6, %p3744_p3 }
  0x74   :  { %3754 = shalt.err (!%p3751_p7)
}
  0x75   :  { %s3825_s8 = smov 448   ;;  %s3826_s30 = smov 28  }
  0x76   :  { %154 = dma.hbm_to_vmem [thread:$0]  %s4127_s14, 14336, %s149_s3, [#allocation18], %s3825_s8, %s3825_s8, %s3826_s30  }
  0x77   :  { %3795 = dma.done.wait [#allocation3], 128  }
  0x78   :  { %3796 = vsyncadd [#allocation3], 4294967168 }
  0x79   :  { %3797 = dma.done.wait [#allocation6], 576  }
  0x7a   :  { %3798 = vsyncadd [#allocation6], 4294966720 }
  0x7b   :  { %3799 = dma.done.wait [#allocation9], 14448  }
  0x7c   :  { %3800 = vsyncadd [#allocation9], 4294952848 }
  0x7d   :  { %3801 = dma.done.wait [#allocation12], 2304  }
  0x7e   :  { %3802 = vsyncadd [#allocation12], 4294964992 }
  0x7f   :  { %3803 = dma.done.wait [#allocation15], 896  }
  0x80   :  { %3804 = vsyncadd [#allocation15], 4294966400 }
  0x81   :  { %3805 = dma.done.wait [#allocation18], 14336  }
  0x82   :  { %3806 = vsyncadd [#allocation18], 4294952960  ;;  %v3827_v0 = vmov 0   ;;  %v190_v1 = vld [vmem:[#allocation7] sm:$0xff]  ;;  %vm253_vm0 = vcmask 1043456   ;;  %v191_v2 = vld [vmem:[#allocation7 + $0x8] sm:$0xff] }
  0x83   :  { %307 = vmatprep.mubr.bf16.mxu0 %v3827_v0  ;;  %348 = vmatprep.mubr.bf16.mxu1 %v3827_v0  ;;  %v188_v3 = vld [vmem:[#allocation2] sm:$0xff]  ;;  %v2761_v4 = vcombine.high %v190_v1, %v190_v1  ;;  %v2760_v5 = vcombine.low %v190_v1, %v190_v1  ;;  %v2763_v6 = vcombine.high %v191_v2, %v191_v2  ;;  %v3135_v11 = vld [vmem:[#allocation7 + $0x18] ss:$0 sps:$4 sm:$0xff]   ;;  %vm249_vm1 = vcmask 64512   ;;  %v3142_v24 = vld [vmem:[#allocation10 + $0x60] ss:$8 sps:$4 sm:$0xff]  }
  0x84   :  { %v2762_v7 = vcombine.low %v191_v2, %v191_v2  ;;  %v192_v8 = vld [vmem:[#allocation7 + $0x10] sm:$0xff]  ;;  %v189_v14 = vpack.c.bf16 %v188_v3, %v188_v3  ;;  %v3828_v16 = vmov 0.0   ;;  %v3138_v17 = vld [vmem:[#allocation10 + $0x74] ss:$8 sps:$4 sm:$0xff]   ;;  %v273_v18 = vsel %vm253_vm0, %v3135_v11, 0  ;;  %s3830_s12 = smov 32  }
  0x85   :  { %v2765_v9 = vcombine.high %v192_v8, %v192_v8  ;;  %v2764_v10 = vcombine.low %v192_v8, %v192_v8  ;;  %2767 = vmatprep.subr.msk.bf16.mxu0 %vm253_vm0, %v2761_v4  ;;  %v255_v12 = vsel %vm253_vm0, %v2760_v5, 0  ;;  %2769 = vmatprep.subr.msk.bf16.mxu1 %vm253_vm0, %v2763_v6  ;;  %v3141_v19 = vld [vmem:[#allocation10 + $0x174] ss:$8 sps:$4 sm:$0xff]   ;;  %vm3829_vm2 = vmmov 0   ;;  %v3136_v20 = vld [vmem:[#allocation10 + $0x70] ss:$8 sps:$4 sm:$0xff]  }
  0x86   :  { %v261_v13 = vsel %vm253_vm0, %v2762_v7, 0  ;;  %290 = vmatpush1.bf16.msra.mxu0 %v255_v12  ;;  %v3139_v21 = vld [vmem:[#allocation10 + $0x170] ss:$8 sps:$4 sm:$0xff]   ;;  %v3144_v22 = vld [vmem:[#allocation10 + $0x64] ss:$8 sps:$4 sm:$0xff]   ;;  %vm1539_vm3 = vcmask 261120  }
  0x87   :  { %331 = vmatpush1.bf16.msra.mxu1 %v261_v13  ;;  %2771 = vmatprep.subr.msk.bf16.mxu0 %vm253_vm0, %v2765_v9  ;;  %v267_v15 = vsel %vm253_vm0, %v2764_v10, 0  ;;  %v3147_v23 = vld [vmem:[#allocation10 + $0x164] ss:$8 sps:$4 sm:$0xff]   ;;  %v3145_v25 = vld [vmem:[#allocation10 + $0x160] ss:$8 sps:$4 sm:$0xff]   ;;  %vm1616_vm4 = vcmask 392192  }
  0x88   :  { %3082 = vmatprep.subr.bf16.mxu1 %v3828_v16  ;;  %v3150_v26 = vld [vmem:[#allocation10 + $0x54] ss:$8 sps:$4 sm:$0xff]   ;;  %v3148_v28 = vld [vmem:[#allocation10 + $0x50] ss:$8 sps:$4 sm:$0xff]   ;;  %v3156_v30 = vld [vmem:[#allocation10 + $0x44] ss:$8 sps:$4 sm:$0xff]  }
  0x89   :  { %2768 = vmatmul.mubr.msk.bf16.vlgmr.msra.gmra.mxu0 %vm249_vm1, %v189_v14  ;;  %v3153_v27 = vld [vmem:[#allocation10 + $0x154] ss:$8 sps:$4 sm:$0xff]   ;;  %v3151_v29 = vld [vmem:[#allocation10 + $0x150] ss:$8 sps:$4 sm:$0xff]   ;;  %v3159_v31 = vld [vmem:[#allocation10 + $0x144] ss:$8 sps:$4 sm:$0xff]  }
  0x8a   :  { %2770 = vmatmul.mubr.msk.bf16.vlgmr.msra.gmra.mxu1 %vm249_vm1, %v189_v14  ;;  %372 = vmatpush1.bf16.msra.mxu0 %v267_v15  ;;  %v3154_v32 = vld [vmem:[#allocation10 + $0x40] ss:$8 sps:$4 sm:$0xff]   ;;  %v3162_v34 = vld [vmem:[#allocation10 + $0x34] ss:$8 sps:$4 sm:$0xff]   ;;  %v3160_v36 = vld [vmem:[#allocation10 + $0x30] ss:$8 sps:$4 sm:$0xff]  }
  0x8b   :  { %389 = vmatprep.mubr.bf16.mxu0 %v3827_v0  ;;  %3083 = vmatpush3.bf16.msra.mxu1 %v273_v18  ;;  %v3157_v33 = vld [vmem:[#allocation10 + $0x140] ss:$8 sps:$4 sm:$0xff]   ;;  %v3165_v35 = vld [vmem:[#allocation10 + $0x134] ss:$8 sps:$4 sm:$0xff]   ;;  %v3163_v37 = vld [vmem:[#allocation10 + $0x130] ss:$8 sps:$4 sm:$0xff]  }
  0x8c   :  { %3084 = vmatprep.mubr.msk.bf16.mxu1 %vm3829_vm2, %v3828_v16  ;;  %1171 = vmatprep.subr.bf16.mxu0 %v3138_v17  ;;  %v3168_v38 = vld [vmem:[#allocation10 + $0x24] ss:$8 sps:$4 sm:$0xff]   ;;  %v3166_v39 = vld [vmem:[#allocation10 + $0x20] ss:$8 sps:$4 sm:$0xff]   ;;  %v3174_v42 = vld [vmem:[#allocation10 + $0x14] ss:$8 sps:$4 sm:$0xff]  }
  0x8d   :  { %1212 = vmatprep.subr.bf16.mxu1 %v3141_v19  ;;  %v3171_v40 = vld [vmem:[#allocation10 + $0x124] ss:$8 sps:$4 sm:$0xff]   ;;  %v3169_v41 = vld [vmem:[#allocation10 + $0x120] ss:$8 sps:$4 sm:$0xff]   ;;  %v3172_v43 = vld [vmem:[#allocation10 + $0x10] ss:$8 sps:$4 sm:$0xff]  }
  0x8e   :  { %v3177_v44 = vld [vmem:[#allocation10 + $0x114] ss:$8 sps:$4 sm:$0xff]   ;;  %v3175_v45 = vld [vmem:[#allocation10 + $0x110] ss:$8 sps:$4 sm:$0xff]   ;;  %v3180_v46 = vld [vmem:[#allocation10 + $0x4] ss:$8 sps:$4 sm:$0xff]  }
  0x8f   :  { %v3178_v47 = vld [vmem:[#allocation10] ss:$8 sps:$4 sm:$0xff]   ;;  %v3183_v48 = vld [vmem:[#allocation10 + $0x104] ss:$8 sps:$4 sm:$0xff]   ;;  %v3186_v50 = vld [vmem:[#allocation10 + $0xf4] ss:$8 sps:$4 sm:$0xff]  }
  0x90   :  { %v3181_v49 = vld [vmem:[#allocation10 + $0x100] ss:$8 sps:$4 sm:$0xff]   ;;  %v3184_v51 = vld [vmem:[#allocation10 + $0xf0] ss:$8 sps:$4 sm:$0xff]   ;;  %v3189_v52 = vld [vmem:[#allocation10 + $0x1f4] ss:$8 sps:$4 sm:$0xff]  }
  0x91   :  { %2772 = vmatmul.mubr.msk.bf16.vlgmr.msra.gmra.mxu0 %vm249_vm1, %v189_v14  ;;  %v3187_v53 = vld [vmem:[#allocation10 + $0x1f0] ss:$8 sps:$4 sm:$0xff]   ;;  %v3192_v54 = vld [vmem:[#allocation10 + $0xe4] ss:$8 sps:$4 sm:$0xff]   ;;  %v3190_v55 = vld [vmem:[#allocation10 + $0xe0] ss:$8 sps:$4 sm:$0xff]  }
  0x92   :  { %3085 = vmatmul.mubr.msk.bf16.vlgmr.msra.gmra.mxu1 %vm249_vm1, %v189_v14  ;;  %1172 = vmatpush1.bf16.msra.mxu0 %v3136_v20  ;;  %v3195_v56 = vld [vmem:[#allocation10 + $0x1e4] ss:$8 sps:$4 sm:$0xff]   ;;  %v3193_v57 = vld [vmem:[#allocation10 + $0x1e0] ss:$8 sps:$4 sm:$0xff]   ;;  %v3198_v58 = vld [vmem:[#allocation10 + $0xd4] ss:$8 sps:$4 sm:$0xff]  }
  0x93   :  { %1213 = vmatpush1.bf16.msra.mxu1 %v3139_v21  ;;  %1173 = vmatprep.subr.bf16.mxu0 %v3144_v22  ;;  %v3196_v59 = vld [vmem:[#allocation10 + $0xd0] ss:$8 sps:$4 sm:$0xff]   ;;  %v3201_v60 = vld [vmem:[#allocation10 + $0x1d4] ss:$8 sps:$4 sm:$0xff]   ;;  %v3204_v62 = vld [vmem:[#allocation10 + $0xc4] ss:$8 sps:$4 sm:$0xff]   ;;  %v196_v22 = vlaneseq }
  0x94   :  { %1214 = vmatprep.subr.bf16.mxu1 %v3147_v23  ;;  %v3199_v61 = vld [vmem:[#allocation10 + $0x1d0] ss:$8 sps:$4 sm:$0xff]   ;;  %v3202_v63 = vld [vmem:[#allocation10 + $0xc0] ss:$8 sps:$4 sm:$0xff]   ;;  %v3207_v1 = vld [vmem:[#allocation10 + $0x1c4] ss:$8 sps:$4 sm:$0xff]  }
  0x95   :  { %v3205_v2 = vld [vmem:[#allocation10 + $0x1c0] ss:$8 sps:$4 sm:$0xff]   ;;  %v3210_v3 = vld [vmem:[#allocation10 + $0xb4] ss:$8 sps:$4 sm:$0xff]   ;;  %v3208_v4 = vld [vmem:[#allocation10 + $0xb0] ss:$8 sps:$4 sm:$0xff]  }
  0x96   :  { %1174 = vmatpush1.bf16.msra.mxu0 %v3142_v24  ;;  %v3213_v5 = vld [vmem:[#allocation10 + $0x1b4] ss:$8 sps:$4 sm:$0xff]   ;;  %v3211_v6 = vld [vmem:[#allocation10 + $0x1b0] ss:$8 sps:$4 sm:$0xff]   ;;  %v3216_v7 = vld [vmem:[#allocation10 + $0xa4] ss:$8 sps:$4 sm:$0xff]  }
  0x97   :  { %1215 = vmatpush1.bf16.msra.mxu1 %v3145_v25  ;;  %1175 = vmatprep.subr.bf16.mxu0 %v3150_v26  ;;  %v3214_v8 = vld [vmem:[#allocation10 + $0xa0] ss:$8 sps:$4 sm:$0xff]   ;;  %v3219_v9 = vld [vmem:[#allocation10 + $0x1a4] ss:$8 sps:$4 sm:$0xff]   ;;  %v3222_v11 = vld [vmem:[#allocation10 + $0x94] ss:$8 sps:$4 sm:$0xff]  }
  0x98   :  { %1216 = vmatprep.subr.bf16.mxu1 %v3153_v27  ;;  %v3217_v10 = vld [vmem:[#allocation10 + $0x1a0] ss:$8 sps:$4 sm:$0xff]   ;;  %v3220_v12 = vld [vmem:[#allocation10 + $0x90] ss:$8 sps:$4 sm:$0xff]   ;;  %v3225_v13 = vld [vmem:[#allocation10 + $0x194] ss:$8 sps:$4 sm:$0xff]  }
  0x99   :  { %v3223_v14 = vld [vmem:[#allocation10 + $0x190] ss:$8 sps:$4 sm:$0xff]   ;;  %v3228_v15 = vld [vmem:[#allocation10 + $0x84] ss:$8 sps:$4 sm:$0xff]   ;;  %v3226_v17 = vld [vmem:[#allocation10 + $0x80] ss:$8 sps:$4 sm:$0xff]  }
  0x9a   :  { %1176 = vmatpush1.bf16.msra.mxu0 %v3148_v28  ;;  %v3231_v18 = vld [vmem:[#allocation10 + $0x184] ss:$8 sps:$4 sm:$0xff]   ;;  %v3229_v19 = vld [vmem:[#allocation10 + $0x180] ss:$8 sps:$4 sm:$0xff]   ;;  %v3234_v20 = vld [vmem:[#allocation10 + $0x274] ss:$8 sps:$4 sm:$0xff]  }
  0x9b   :  { %1217 = vmatpush1.bf16.msra.mxu1 %v3151_v29  ;;  %1177 = vmatprep.subr.bf16.mxu0 %v3156_v30  ;;  %v3258_v21 = vld [vmem:[#allocation10 + $0x374] ss:$8 sps:$4 sm:$0xff]   ;;  %v3991_v23 = vshrl.u32 %v196_v22, 7 }
  0x9c   :  { %1218 = vmatprep.subr.bf16.mxu1 %v3159_v31  ;;  %v194_v26 = vld [vmem:[#allocation8] sm:$0xff] }
  0x9d   :  { %v3994_v24 = vsub.s32 0, %v3991_v23  ;;  %v206_v25 = vsub.s32 2, %v3991_v23  ;;  %v3998_v27 = vsub.s32 1, %v3991_v23  ;;  %v210_v28 = vsub.s32 3, %v3991_v23 }
  0x9e   :  { %1178 = vmatpush1.bf16.msra.mxu0 %v3154_v32 }
  0x9f   :  { %1219 = vmatpush1.bf16.msra.mxu1 %v3157_v33  ;;  %1179 = vmatprep.subr.bf16.mxu0 %v3162_v34  ;;  %v199_v29 = vrot.slane %v194_v26, %v3994_v24  ;;  %v207_v30 = vrot.slane %v194_v26, %v206_v25  ;;  %v203_v31 = vrot.slane %v194_v26, %v3998_v27 }
  0xa0   :  { %1220 = vmatprep.subr.bf16.mxu1 %v3165_v35  ;;  %v211_v32 = vrot.slane %v194_v26, %v210_v28  ;;  %v214_v35 = vsub.s32 4, %v3991_v23 }
  0xa2   :  { %1180 = vmatpush1.bf16.msra.mxu0 %v3160_v36  ;;  %v222_v36 = vsub.s32 6, %v3991_v23 }
  0xa3   :  { %1221 = vmatpush1.bf16.msra.mxu1 %v3163_v37  ;;  %1181 = vmatprep.subr.bf16.mxu0 %v3168_v38 }
  0xa4   :  { %1222 = vmatprep.subr.bf16.mxu1 %v3171_v40 }
  0xa6   :  { %1182 = vmatpush1.bf16.msra.mxu0 %v3166_v39 }
  0xa7   :  { %1183 = vmatprep.subr.bf16.mxu0 %v3174_v42  ;;  %1223 = vmatpush1.bf16.msra.mxu1 %v3169_v41  ;;  %v218_v41 = vsub.s32 5, %v3991_v23 }
  0xa8   :  { %1224 = vmatprep.subr.bf16.mxu1 %v3177_v44 }
  0xaa   :  { %1184 = vmatpush1.bf16.msra.mxu0 %v3172_v43 }
  0xab   :  { %1185 = vmatprep.subr.bf16.mxu0 %v3180_v46  ;;  %1225 = vmatpush1.bf16.msra.mxu1 %v3175_v45 }
  0xac   :  { %1226 = vmatprep.subr.bf16.mxu1 %v3183_v48  ;;  %v215_v48 = vrot.slane %v194_v26, %v214_v35 }
  0xae   :  { %1186 = vmatpush1.bf16.msra.mxu0 %v3178_v47 }
  0xaf   :  { %1187 = vmatprep.subr.bf16.mxu0 %v3186_v50  ;;  %1227 = vmatpush1.bf16.msra.mxu1 %v3181_v49  ;;  %v223_v49 = vrot.slane %v194_v26, %v222_v36 }
  0xb0   :  { %1228 = vmatprep.subr.bf16.mxu1 %v3189_v52 }
  0xb2   :  { %1188 = vmatpush2.bf16.msra.mxu0 %v3184_v51 }
  0xb3   :  { %1189 = vmatprep.subr.bf16.mxu0 %v3192_v54  ;;  %1229 = vmatpush2.bf16.msra.mxu1 %v3187_v53 }
  0xb4   :  { %1230 = vmatprep.subr.bf16.mxu1 %v3195_v56 }
  0xb6   :  { %1190 = vmatpush2.bf16.msra.mxu0 %v3190_v55 }
  0xb7   :  { %1191 = vmatprep.subr.bf16.mxu0 %v3198_v58  ;;  %1231 = vmatpush2.bf16.msra.mxu1 %v3193_v57  ;;  %v219_v58 = vrot.slane %v194_v26, %v218_v41 }
  0xb8   :  { %1232 = vmatprep.subr.bf16.mxu1 %v3201_v60 }
  0xba   :  { %1192 = vmatpush2.bf16.msra.mxu0 %v3196_v59 }
  0xbb   :  { %1193 = vmatprep.subr.bf16.mxu0 %v3204_v62  ;;  %1233 = vmatpush2.bf16.msra.mxu1 %v3199_v61 }
  0xbc   :  { %1234 = vmatprep.subr.bf16.mxu1 %v3207_v1 }
  0xbe   :  { %1194 = vmatpush2.bf16.msra.mxu0 %v3202_v63 }
  0xbf   :  { %1195 = vmatprep.subr.bf16.mxu0 %v3210_v3  ;;  %1235 = vmatpush2.bf16.msra.mxu1 %v3205_v2 }
  0xc0   :  { %1236 = vmatprep.subr.bf16.mxu1 %v3213_v5 }
  0xc2   :  { %1196 = vmatpush2.bf16.msra.mxu0 %v3208_v4 }
  0xc3   :  { %1197 = vmatprep.subr.bf16.mxu0 %v3216_v7  ;;  %1237 = vmatpush2.bf16.msra.mxu1 %v3211_v6 }
  0xc4   :  { %1238 = vmatprep.subr.bf16.mxu1 %v3219_v9 }
  0xc6   :  { %1198 = vmatpush2.bf16.msra.mxu0 %v3214_v8 }
  0xc7   :  { %1199 = vmatprep.subr.bf16.mxu0 %v3222_v11  ;;  %1239 = vmatpush2.bf16.msra.mxu1 %v3217_v10 }
  0xc8   :  { %1240 = vmatprep.subr.bf16.mxu1 %v3225_v13 }
  0xca   :  { %1200 = vmatpush2.bf16.msra.mxu0 %v3220_v12 }
  0xcb   :  { %1201 = vmatprep.subr.bf16.mxu0 %v3228_v15  ;;  %1241 = vmatpush2.bf16.msra.mxu1 %v3223_v14 }
  0xcc   :  { %1242 = vmatprep.subr.bf16.mxu1 %v3231_v18 }
  0xce   :  { %1202 = vmatpush2.bf16.msra.mxu0 %v3226_v17 }
  0xcf   :  { %1243 = vmatpush2.bf16.msra.mxu1 %v3229_v19  ;;  %1253 = vmatprep.subr.bf16.mxu0 %v3234_v20 }
  0xd0   :  { %1294 = vmatprep.subr.bf16.mxu1 %v3258_v21 }
 0x149   :  { %v309_v33 = vpop.f32.mrf.mxu0 }
 0x14a   :  { %v350_v34 = vpop.f32.mrf.mxu1  ;;  %v310_v37 = vadd.f32 %v309_v33, %v199_v29 }
 0x14b   :  { %v351_v38 = vadd.f32 %v350_v34, %v207_v30  ;;  %v311_v39 = vpop.f32.mrf.mxu0 }
 0x14c   :  { %v352_v40 = vpop.f32.mrf.mxu1  ;;  %v438_v42 = vsub.f32 0.0, %v310_v37  ;;  %v312_v43 = vadd.f32 %v311_v39, %v203_v31 }
 0x14d   :  { %v440_v44 = vsub.f32 0.0, %v351_v38  ;;  %v353_v45 = vadd.f32 %v352_v40, %v211_v32  ;;  %v313_v46 = vpop.f32.mrf.mxu0 }
 0x14e   :  { %v354_v47 = vpop.f32.mrf.mxu1  ;;  %v445_v50 = vmul.f32 1.442695, %v438_v42  ;;  %v439_v51 = vsub.f32 0.0, %v312_v43  ;;  %v3232_v42 = vld [vmem:[#allocation10 + $0x270] ss:$8 sps:$4 sm:$0xff]  }
 0x14f   :  { %v449_v52 = vmul.f32 1.442695, %v440_v44  ;;  %v441_v53 = vsub.f32 0.0, %v353_v45  ;;  %v314_v54 = vpop.f32.mrf.mxu0  ;;  %v3237_v46 = vld [vmem:[#allocation10 + $0x264] ss:$8 sps:$4 sm:$0xff]  }
 0x150   :  { %v355_v55 = vpop.f32.mrf.mxu1  ;;  %3491 = vpow2.f32 %v445_v50  ;;  %v447_v56 = vmul.f32 1.442695, %v439_v51  ;;  %v3256_v47 = vld [vmem:[#allocation10 + $0x370] ss:$8 sps:$4 sm:$0xff]   ;;  %v3240_v51 = vld [vmem:[#allocation10 + $0x254] ss:$8 sps:$4 sm:$0xff]  }
 0x151   :  { %v451_v57 = vmul.f32 1.442695, %v441_v53  ;;  %3493 = vpow2.f32 %v449_v52  ;;  %v391_v59 = vpop.f32.mrf.mxu0  ;;  %v3262_v52 = vld [vmem:[#allocation10 + $0x360] ss:$8 sps:$4 sm:$0xff]   ;;  %v3270_v54 = vld [vmem:[#allocation10 + $0x354] ss:$8 sps:$4 sm:$0xff]  }
 0x152   :  { %v432_v60 = vpop.f32.mrf.mxu1  ;;  %3495 = vpow2.f32 %v447_v56  ;;  %v392_v61 = vadd.f32 %v391_v59, %v215_v48  ;;  %v3264_v48 = vld [vmem:[#allocation10 + $0x364] ss:$8 sps:$4 sm:$0xff]   ;;  %v3238_v56 = vld [vmem:[#allocation10 + $0x250] ss:$8 sps:$4 sm:$0xff]  }
 0x153   :  { %v433_v62 = vadd.f32 %v432_v60, %v223_v49  ;;  %3497 = vpow2.f32 %v451_v57  ;;  %v393_v63 = vpop.f32.mrf.mxu0  ;;  %v3235_v49 = vld [vmem:[#allocation10 + $0x260] ss:$8 sps:$4 sm:$0xff]   ;;  %v3268_v59 = vld [vmem:[#allocation10 + $0x350] ss:$8 sps:$4 sm:$0xff]   ;;  %v3276_v60 = vld [vmem:[#allocation10 + $0x344] ss:$8 sps:$4 sm:$0xff]  }
 0x154   :  { %v3086_v1 = vpop.f32.mrf.mxu1  ;;  %v442_v2 = vsub.f32 0.0, %v392_v61  ;;  %v394_v3 = vadd.f32 %v393_v63, %v219_v58  ;;  %v3243_v58 = vld [vmem:[#allocation10 + $0x244] ss:$8 sps:$4 sm:$0xff]   ;;  %v3241_v61 = vld [vmem:[#allocation10 + $0x240] ss:$8 sps:$4 sm:$0xff]  }
 0x155   :  { %v444_v4 = vsub.f32 0.0, %v433_v62  ;;  %v395_v5 = vpop.f32.mrf.mxu0  ;;  %v3246_v62 = vld [vmem:[#allocation10 + $0x234] ss:$8 sps:$4 sm:$0xff]   ;;  %v3274_v63 = vld [vmem:[#allocation10 + $0x340] ss:$8 sps:$4 sm:$0xff]  }
 0x156   :  { %v435_v6 = vpop.f32.mrf.mxu1  ;;  %v453_v7 = vmul.f32 1.442695, %v442_v2  ;;  %v443_v8 = vsub.f32 0.0, %v394_v3  ;;  %v3282_v1 = vld [vmem:[#allocation10 + $0x334] ss:$8 sps:$4 sm:$0xff]  }
 0x157   :  { %v457_v9 = vmul.f32 1.442695, %v444_v4  ;;  %v396_v10 = vpop.f32.mrf.mxu0  ;;  %v3244_v2 = vld [vmem:[#allocation10 + $0x230] ss:$8 sps:$4 sm:$0xff]   ;;  %v3249_v3 = vld [vmem:[#allocation10 + $0x224] ss:$8 sps:$4 sm:$0xff]  }
 0x158   :  { %v3087_v11 = vpop.f32.mrf.mxu1  ;;  %3499 = vpow2.f32 %v453_v7  ;;  %v455_v12 = vmul.f32 1.442695, %v443_v8  ;;  %v3280_v4 = vld [vmem:[#allocation10 + $0x330] ss:$8 sps:$4 sm:$0xff]   ;;  %v3288_v5 = vld [vmem:[#allocation10 + $0x324] ss:$8 sps:$4 sm:$0xff]  }
 0x159   :  { %3501 = vpow2.f32 %v457_v9  ;;  %v3247_v6 = vld [vmem:[#allocation10 + $0x220] ss:$8 sps:$4 sm:$0xff]   ;;  %v3252_v7 = vld [vmem:[#allocation10 + $0x214] ss:$8 sps:$4 sm:$0xff]   ;;  %v3250_v10 = vld [vmem:[#allocation10 + $0x210] ss:$8 sps:$4 sm:$0xff]  }
 0x15a   :  { %3503 = vpow2.f32 %v455_v12  ;;  %v3286_v8 = vld [vmem:[#allocation10 + $0x320] ss:$8 sps:$4 sm:$0xff]   ;;  %v3294_v9 = vld [vmem:[#allocation10 + $0x314] ss:$8 sps:$4 sm:$0xff]   ;;  %v3255_v11 = vld [vmem:[#allocation10 + $0x204] ss:$8 sps:$4 sm:$0xff]  }
 0x15b   :  { %v3292_v12 = vld [vmem:[#allocation10 + $0x310] ss:$8 sps:$4 sm:$0xff]  }
 0x15d   :  { %v3492_v13 = vpop.eup %3491 }
 0x15e   :  { %v3494_v14 = vpop.eup %3493  ;;  %v459_v15 = vadd.f32 1.0, %v3492_v13  ;;  %v3300_v13 = vld [vmem:[#allocation10 + $0x304] ss:$8 sps:$4 sm:$0xff]  }
 0x15f   :  { %v3496_v17 = vpop.eup %3495  ;;  %v461_v18 = vadd.f32 1.0, %v3494_v14  ;;  %v3253_v14 = vld [vmem:[#allocation10 + $0x200] ss:$8 sps:$4 sm:$0xff]  }
 0x160   :  { %v3498_v19 = vpop.eup %3497  ;;  %3505 = vrcp.f32 %v459_v15  ;;  %v460_v20 = vadd.f32 1.0, %v3496_v17  ;;  %v3261_v15 = vld [vmem:[#allocation10 + $0x2f4] ss:$8 sps:$4 sm:$0xff]   ;;  %v3298_v17 = vld [vmem:[#allocation10 + $0x300] ss:$8 sps:$4 sm:$0xff]  }
 0x161   :  { %3507 = vrcp.f32 %v461_v18  ;;  %v462_v21 = vadd.f32 1.0, %v3498_v19  ;;  %v3259_v18 = vld [vmem:[#allocation10 + $0x2f0] ss:$8 sps:$4 sm:$0xff]  }
 0x162   :  { %3509 = vrcp.f32 %v460_v20  ;;  %v3267_v20 = vld [vmem:[#allocation10 + $0x2e4] ss:$8 sps:$4 sm:$0xff]  }
 0x163   :  { %3511 = vrcp.f32 %v462_v21  ;;  %v3265_v21 = vld [vmem:[#allocation10 + $0x2e0] ss:$8 sps:$4 sm:$0xff]  }
 0x165   :  { %v3500_v26 = vpop.eup %3499 }
 0x166   :  { %v3502_v29 = vpop.eup %3501  ;;  %v463_v30 = vadd.f32 1.0, %v3500_v26  ;;  %v3273_v26 = vld [vmem:[#allocation10 + $0x2d4] ss:$8 sps:$4 sm:$0xff]  }
 0x167   :  { %v3504_v31 = vpop.eup %3503  ;;  %v465_v32 = vadd.f32 1.0, %v3502_v29  ;;  %v3271_v29 = vld [vmem:[#allocation10 + $0x2d0] ss:$8 sps:$4 sm:$0xff]  }
 0x168   :  { %3513 = vrcp.f32 %v463_v30  ;;  %v464_v33 = vadd.f32 1.0, %v3504_v31  ;;  %v3279_v30 = vld [vmem:[#allocation10 + $0x2c4] ss:$8 sps:$4 sm:$0xff]   ;;  %v3277_v31 = vld [vmem:[#allocation10 + $0x2c0] ss:$8 sps:$4 sm:$0xff]  }
 0x169   :  { %3515 = vrcp.f32 %v465_v32  ;;  %v3285_v32 = vld [vmem:[#allocation10 + $0x2b4] ss:$8 sps:$4 sm:$0xff]  }
 0x16a   :  { %3517 = vrcp.f32 %v464_v33  ;;  %v3283_v33 = vld [vmem:[#allocation10 + $0x2b0] ss:$8 sps:$4 sm:$0xff]  }
 0x16d   :  { %v3506_v34 = vpop.eup %3505 }
 0x16e   :  { %v3508_v37 = vpop.eup %3507  ;;  %473 = vst [vmem:[#allocation20] sm:$0xff] %v3506_v34  ;;  %v480_v44 = vpack.c.bf16 %v3506_v34, %v3506_v34  ;;  %v3291_v34 = vld [vmem:[#allocation10 + $0x2a4] ss:$8 sps:$4 sm:$0xff]  }
 0x16f   :  { %v3510_v38 = vpop.eup %3509  ;;  %475 = vst [vmem:[#allocation20 + $0x10] sm:$0xff] %v3508_v37  ;;  %v482_v43 = vpack.c.bf16 %v3508_v37, %v3508_v37  ;;  %v3289_v37 = vld [vmem:[#allocation10 + $0x2a0] ss:$8 sps:$4 sm:$0xff]  }
 0x170   :  { %v3512_v39 = vpop.eup %3511  ;;  %474 = vst [vmem:[#allocation20 + $0x8] sm:$0xff] %v3510_v38  ;;  %v481_v40 = vpack.c.bf16 %v3510_v38, %v3510_v38  ;;  %v3297_v38 = vld [vmem:[#allocation10 + $0x294] ss:$8 sps:$4 sm:$0xff]  }
 0x171   :  { %476 = vst [vmem:[#allocation20 + $0x18] sm:$0xff] %v3512_v39  ;;  %v483_v45 = vpack.c.bf16 %v3512_v39, %v3512_v39  ;;  %v3295_v39 = vld [vmem:[#allocation10 + $0x290] ss:$8 sps:$4 sm:$0xff]  }
 0x172   :  { %1203 = vmatprep.mubr.bf16.mxu0 %v481_v40  ;;  %v3303_v40 = vld [vmem:[#allocation10 + $0x284] ss:$8 sps:$4 sm:$0xff]  }
 0x173   :  { %1204 = vmatmul.mubr.bf16.vlgmr.msra.gmra.mxu0 %v480_v44  ;;  %1244 = vmatprep.mubr.bf16.mxu1 %v483_v45  ;;  %v3304_v44 = vld [vmem:[#allocation11 + $0x78] sm:$0xff]  }
 0x174   :  { %1254 = vmatpush1.bf16.msra.mxu0 %v3232_v42  ;;  %1245 = vmatmul.mubr.bf16.vlgmr.msra.gmra.mxu1 %v482_v43  ;;  %v3301_v42 = vld [vmem:[#allocation10 + $0x280] ss:$8 sps:$4 sm:$0xff]   ;;  %v3305_v45 = vld [vmem:[#allocation11 + $0x38] sm:$0xff]  }
 0x175   :  { %v4016_v50 = vpop.eup %3513  ;;  %1255 = vmatprep.subr.bf16.mxu0 %v3237_v46  ;;  %1295 = vmatpush1.bf16.msra.mxu1 %v3256_v47  ;;  %v3306_v46 = vld [vmem:[#allocation11 + $0x70] sm:$0xff]  }
 0x176   :  { %v4018_v53 = vpop.eup %3515  ;;  %477 = vst [vmem:[#allocation20 + $0x20] sm:$0xff] %v4016_v50  ;;  %1296 = vmatprep.subr.bf16.mxu1 %v3264_v48  ;;  %1326 = vmatprep.mubr.bf16.mxu1 %v3827_v0  ;;  %v484_v43 = vpack.c.bf16 %v4016_v50, %v4016_v50  ;;  %v3307_v47 = vld [vmem:[#allocation11 + $0x30] sm:$0xff]   ;;  %v3308_v48 = vld [vmem:[#allocation11 + $0x68] sm:$0xff]   ;;  %v3311_v50 = vld [vmem:[#allocation11 + $0x20] sm:$0xff]  }
 0x177   :  { %v3518_v55 = vpop.eup %3517  ;;  %479 = vst [vmem:[#allocation20 + $0x30] sm:$0xff] %v4018_v53  ;;  %v486_v19 = vpack.c.bf16 %v4018_v53, %v4018_v53  ;;  %v3313_v53 = vld [vmem:[#allocation11 + $0x18] sm:$0xff]  }
 0x178   :  { %1256 = vmatpush1.bf16.msra.mxu0 %v3235_v49  ;;  %478 = vst [vmem:[#allocation20 + $0x28] sm:$0xff] %v3518_v55  ;;  %v485_v57 = vpack.c.bf16 %v3518_v55, %v3518_v55  ;;  %v3309_v49 = vld [vmem:[#allocation11 + $0x28] sm:$0xff]   ;;  %v3315_v55 = vld [vmem:[#allocation11 + $0x10] sm:$0xff]  }
 0x179   :  { %1257 = vmatprep.subr.bf16.mxu0 %v3240_v51  ;;  %1297 = vmatpush1.bf16.msra.mxu1 %v3262_v52  ;;  %v3310_v51 = vld [vmem:[#allocation11 + $0x60] sm:$0xff]   ;;  %v3312_v52 = vld [vmem:[#allocation11 + $0x58] sm:$0xff]  }
 0x17a   :  { %1298 = vmatprep.subr.bf16.mxu1 %v3270_v54  ;;  %1285 = vmatprep.mubr.bf16.mxu0 %v485_v57  ;;  %v3314_v54 = vld [vmem:[#allocation11 + $0x50] sm:$0xff]   ;;  %v3317_v57 = vld [vmem:[#allocation11 + $0x8] sm:$0xff]  }
 0x17c   :  { %1258 = vmatpush1.bf16.msra.mxu0 %v3238_v56  ;;  %v3316_v56 = vld [vmem:[#allocation11 + $0x48] sm:$0xff]  }
 0x17d   :  { %1259 = vmatprep.subr.bf16.mxu0 %v3243_v58  ;;  %1299 = vmatpush1.bf16.msra.mxu1 %v3268_v59  ;;  %v3318_v58 = vld [vmem:[#allocation11 + $0x40] sm:$0xff]  }
 0x17e   :  { %1300 = vmatprep.subr.bf16.mxu1 %v3276_v60  ;;  %v3319_v59 = vld [vmem:[#allocation11] sm:$0xff]   ;;  %v1676_v60 = vld [vmem:[#allocation5] sm:$0xff] }
 0x17f   :  { %1678 = vrot.lane.b32.xlu0 %v1676_v60, %s3830_s12  ;;  %v3339_v60 = vld [vmem:[#allocation17 + $0x154] ss:$28 sps:$4 sm:$0xff]  }
 0x180   :  { %1260 = vmatpush1.bf16.msra.mxu0 %v3241_v61 }
 0x181   :  { %1261 = vmatprep.subr.bf16.mxu0 %v3246_v62  ;;  %1301 = vmatpush1.bf16.msra.mxu1 %v3274_v63 }
 0x182   :  { %1302 = vmatprep.subr.bf16.mxu1 %v3282_v1 }
 0x184   :  { %1262 = vmatpush1.bf16.msra.mxu0 %v3244_v2 }
 0x185   :  { %1263 = vmatprep.subr.bf16.mxu0 %v3249_v3  ;;  %1303 = vmatpush1.bf16.msra.mxu1 %v3280_v4 }
 0x186   :  { %1304 = vmatprep.subr.bf16.mxu1 %v3288_v5 }
 0x188   :  { %1264 = vmatpush1.bf16.msra.mxu0 %v3247_v6 }
 0x189   :  { %1265 = vmatprep.subr.bf16.mxu0 %v3252_v7  ;;  %1305 = vmatpush1.bf16.msra.mxu1 %v3286_v8 }
 0x18a   :  { %1306 = vmatprep.subr.bf16.mxu1 %v3294_v9 }
 0x18c   :  { %1266 = vmatpush1.bf16.msra.mxu0 %v3250_v10  ;;  %v599_v10 = vld [vmem:[%s4118_s5] sm:$0x3] }
 0x18d   :  { %1267 = vmatprep.subr.bf16.mxu0 %v3255_v11  ;;  %1307 = vmatpush1.bf16.msra.mxu1 %v3292_v12  ;;  %v604_v11 = vrot.slane %v599_v10, %v3994_v24  ;;  %v608_v12 = vrot.slane %v599_v10, %v3998_v27  ;;  %v3381_v10 = vld [vmem:[#allocation17 + $0x34c] ss:$28 sps:$4 sm:$0xff]  }
 0x18e   :  { %1308 = vmatprep.subr.bf16.mxu1 %v3300_v13 }
 0x190   :  { %1268 = vmatpush1.bf16.msra.mxu0 %v3253_v14 }
 0x191   :  { %1269 = vmatprep.subr.bf16.mxu0 %v3261_v15  ;;  %1309 = vmatpush1.bf16.msra.mxu1 %v3298_v17 }
 0x192   :  { %3031 = vmatprep.subr.bf16.mxu1 %v3304_v44 }
 0x194   :  { %1270 = vmatpush2.bf16.msra.mxu0 %v3259_v18  ;;  %1327 = vmatmul.mubr.bf16.vlgmr.msra.gmra.mxu1 %v486_v19 }
 0x195   :  { %1271 = vmatprep.subr.bf16.mxu0 %v3267_v20  ;;  %3032 = vmatpush3.bf16.msra.mxu1 %v3305_v45 }
 0x196   :  { %3033 = vmatprep.subr.bf16.mxu1 %v3306_v46 }
 0x198   :  { %1272 = vmatpush2.bf16.msra.mxu0 %v3265_v21 }
 0x199   :  { %1273 = vmatprep.subr.bf16.mxu0 %v3273_v26  ;;  %3034 = vmatpush3.bf16.msra.mxu1 %v3307_v47 }
 0x19a   :  { %3035 = vmatprep.subr.bf16.mxu1 %v3308_v48 }
 0x19c   :  { %1274 = vmatpush2.bf16.msra.mxu0 %v3271_v29 }
 0x19d   :  { %1275 = vmatprep.subr.bf16.mxu0 %v3279_v30  ;;  %3036 = vmatpush3.bf16.msra.mxu1 %v3309_v49 }
 0x19e   :  { %3037 = vmatprep.subr.bf16.mxu1 %v3310_v51 }
 0x1a0   :  { %1276 = vmatpush2.bf16.msra.mxu0 %v3277_v31 }
 0x1a1   :  { %1277 = vmatprep.subr.bf16.mxu0 %v3285_v32  ;;  %3038 = vmatpush3.bf16.msra.mxu1 %v3311_v50  ;;  %v3322_v50 = vld [vmem:[#allocation14 + $0x10] sm:$0xff]  }
 0x1a2   :  { %3039 = vmatprep.subr.bf16.mxu1 %v3312_v52  ;;  %v3323_v52 = vld [vmem:[#allocation14 + $0x8] sm:$0xff]  }
 0x1a4   :  { %1278 = vmatpush2.bf16.msra.mxu0 %v3283_v33 }
 0x1a5   :  { %1279 = vmatprep.subr.bf16.mxu0 %v3291_v34  ;;  %3040 = vmatpush3.bf16.msra.mxu1 %v3313_v53 }
 0x1a6   :  { %3041 = vmatprep.subr.bf16.mxu1 %v3314_v54 }
 0x1a8   :  { %1280 = vmatpush2.bf16.msra.mxu0 %v3289_v37 }
 0x1a9   :  { %1281 = vmatprep.subr.bf16.mxu0 %v3297_v38  ;;  %3042 = vmatpush3.bf16.msra.mxu1 %v3315_v55  ;;  %v3320_v38 = vld [vmem:[#allocation13 + $0x8] sm:$0xff]  }
 0x1aa   :  { %3043 = vmatprep.subr.bf16.mxu1 %v3316_v56  ;;  %v3324_v56 = vld [vmem:[#allocation14] sm:$0xff]  }
 0x1ac   :  { %1282 = vmatpush2.bf16.msra.mxu0 %v3295_v39  ;;  %v3321_v39 = vld [vmem:[#allocation13] sm:$0xff]  }
 0x1ad   :  { %1283 = vmatprep.subr.bf16.mxu0 %v3303_v40  ;;  %3044 = vmatpush3.bf16.msra.mxu1 %v3317_v57  ;;  %v3327_v57 = vld [vmem:[#allocation16 + $0x14] ss:$8 sps:$4 sm:$0xff]  }
 0x1ae   :  { %3045 = vmatprep.subr.bf16.mxu1 %v3318_v58  ;;  %v3331_v58 = vld [vmem:[#allocation17 + $0x188] ss:$28 sps:$4 sm:$0xff]  }
 0x1b0   :  { %1284 = vmatpush2.bf16.msra.mxu0 %v3301_v42  ;;  %v2886_v42 = vld [vmem:[%s4120_s7] ss:$0 sm:$0xff]  ;;  %s3831_s7 = smov 96  }
 0x1b1   :  { %3088 = vmatprep.subr.bf16.mxu0 %v3828_v16  ;;  %3046 = vmatpush3.bf16.msra.mxu1 %v3319_v59  ;;  %v3333_v59 = vld [vmem:[#allocation17 + $0x18c] ss:$28 sps:$4 sm:$0xff]  }
 0x1b2   :  { %2513 = vmatprep.subr.bf16.mxu1 %v3333_v59  ;;  %v3390_v59 = vld [vmem:[#allocation17 + $0x31c] ss:$28 sps:$4 sm:$0xff]  }
 0x1b3   :  { %1286 = vmatmul.mubr.bf16.vlgmr.msra.gmra.mxu0 %v484_v43 }
 0x1b4   :  { %3092 = vmatprep.mubr.msk.bf16.mxu0 %vm3829_vm2, %v3828_v16  ;;  %3089 = vmatpush3.bf16.msra.mxu0 %v3320_v38  ;;  %v3328_v38 = vld [vmem:[#allocation16] ss:$8 sps:$4 sm:$0xff]  }
 0x1b5   :  { %3090 = vmatprep.subr.bf16.mxu0 %v3828_v16 }
 0x1b8   :  { %3091 = vmatpush3.bf16.msra.mxu0 %v3321_v39 }
 0x1b9   :  { %3096 = vmatprep.subr.bf16.mxu0 %v3828_v16 }
 0x1f1   :  { %v1679_v53 = vpop.permute.xlu0 %1678 }
 0x233   :  { %v1205_v61 = vpop.f32.mrf.mxu0 }
 0x234   :  { %v1246_v62 = vpop.f32.mrf.mxu1  ;;  %v1206_v13 = vadd.f32 %v1205_v61, %v604_v11  ;;  %v3337_v61 = vld [vmem:[#allocation17 + $0x150] ss:$28 sps:$4 sm:$0xff]   ;;  %v3379_v11 = vld [vmem:[#allocation17 + $0x348] ss:$28 sps:$4 sm:$0xff]  }
 0x235   :  { %v1207_v63 = vpop.f32.mrf.mxu0 }
 0x236   :  { %v1248_v1 = vpop.f32.mrf.mxu1  ;;  %v1208_v14 = vadd.f32 %v1207_v63, %v608_v12  ;;  %v1247_v15 = vadd.f32 %v1246_v62, %v1206_v13  ;;  %v3345_v62 = vld [vmem:[#allocation17 + $0x11c] ss:$28 sps:$4 sm:$0xff]   ;;  %v3387_v12 = vld [vmem:[#allocation17 + $0x314] ss:$28 sps:$4 sm:$0xff]  }
 0x237   :  { %v1209_v2 = vpop.f32.mrf.mxu0  ;;  %v3343_v63 = vld [vmem:[#allocation17 + $0x118] ss:$28 sps:$4 sm:$0xff]   ;;  %v3385_v13 = vld [vmem:[#allocation17 + $0x310] ss:$28 sps:$4 sm:$0xff]  }
 0x238   :  { %v1250_v3 = vpop.f32.mrf.mxu1  ;;  %v1249_v18 = vadd.f32 %v1248_v1, %v1208_v14  ;;  %v3349_v1 = vld [vmem:[#allocation17 + $0xe0] ss:$28 sps:$4 sm:$0xff]   ;;  %v3357_v2 = vld [vmem:[#allocation17 + $0xac] ss:$28 sps:$4 sm:$0xff]  }
 0x239   :  { %v1210_v4 = vpop.f32.mrf.mxu0  ;;  %v3355_v3 = vld [vmem:[#allocation17 + $0xa8] ss:$28 sps:$4 sm:$0xff]   ;;  %v3393_v14 = vld [vmem:[#allocation17 + $0x2dc] ss:$28 sps:$4 sm:$0xff]  }
 0x23a   :  { %v1251_v5 = vpop.f32.mrf.mxu1  ;;  %v3363_v4 = vld [vmem:[#allocation17 + $0x74] ss:$28 sps:$4 sm:$0xff]  }
 0x23b   :  { %v3361_v5 = vld [vmem:[#allocation17 + $0x70] ss:$28 sps:$4 sm:$0xff]  }
 0x254   :  { %v1328_v6 = vpop.f32.mrf.mxu1 }
 0x256   :  { %v1330_v7 = vpop.f32.mrf.mxu1 }
 0x258   :  { %v1332_v8 = vpop.f32.mrf.mxu1 }
 0x259   :  { %v3375_v8 = vld [vmem:[#allocation17 + $0x4] ss:$28 sps:$4 sm:$0xff]  }
 0x25a   :  { %v1333_v9 = vpop.f32.mrf.mxu1 }
 0x25b   :  { %v3373_v9 = vld [vmem:[#allocation17] ss:$28 sps:$4 sm:$0xff]  }
 0x273   :  { %v1287_v17 = vpop.f32.mrf.mxu0 }
 0x274   :  { %v1288_v19 = vadd.f32 %v1287_v17, %v1247_v15  ;;  %v3391_v15 = vld [vmem:[#allocation17 + $0x2d8] ss:$28 sps:$4 sm:$0xff]   ;;  %v3399_v17 = vld [vmem:[#allocation17 + $0x2a4] ss:$28 sps:$4 sm:$0xff]  }
 0x275   :  { %v1289_v20 = vpop.f32.mrf.mxu0 }
 0x276   :  { %v1329_v21 = vadd.f32 %v1328_v6, %v1288_v19  ;;  %v1290_v26 = vadd.f32 %v1289_v20, %v1249_v18  ;;  %v3369_v6 = vld [vmem:[#allocation17 + $0x3c] ss:$28 sps:$4 sm:$0xff]   ;;  %v2903_v19 = vld [vmem:[%s4122_s9] ss:$0 sm:$0xff] }
 0x277   :  { %v1291_v29 = vpop.f32.mrf.mxu0  ;;  %v3397_v18 = vld [vmem:[#allocation17 + $0x2a0] ss:$28 sps:$4 sm:$0xff]  }
 0x278   :  { %v1331_v30 = vadd.f32 %v1330_v7, %v1290_v26  ;;  %v1335_v31 = vmax.f32 %v1329_v21, 0.0  ;;  %v3367_v7 = vld [vmem:[#allocation17 + $0x38] ss:$28 sps:$4 sm:$0xff]  }
 0x279   :  { %v1292_v32 = vpop.f32.mrf.mxu0 }
 0x27a   :  { %v1336_v33 = vmax.f32 %v1331_v30, 0.0  ;;  %v1337_v37 = vpack.c.bf16 %v1335_v31, %v1335_v31  ;;  %v3325_v31 = vld [vmem:[#allocation16 + $0x10] ss:$8 sps:$4 sm:$0xff]  }
 0x27c   :  { %v1338_v34 = vpack.c.bf16 %v1336_v33, %v1336_v33  ;;  %v3330_v33 = vld [vmem:[#allocation16 + $0x4] ss:$8 sps:$4 sm:$0xff]  }
 0x27e   :  { %1506 = vmatprep.mubr.bf16.mxu1 %v1338_v34 }
 0x27f   :  { %1507 = vmatmul.mubr.bf16.vlgmr.msra.gmra.mxu1 %v1337_v37 }
 0x280   :  { %2514 = vmatpush1.bf16.msra.mxu1 %v3331_v58  ;;  %v3382_v58 = vld [vmem:[#allocation17 + $0x350] ss:$28 sps:$4 sm:$0xff]  }
 0x281   :  { %2515 = vmatprep.subr.bf16.mxu1 %v3339_v60  ;;  %v3388_v60 = vld [vmem:[#allocation17 + $0x318] ss:$28 sps:$4 sm:$0xff]  }
 0x284   :  { %2516 = vmatpush1.bf16.msra.mxu1 %v3337_v61  ;;  %v3396_v61 = vld [vmem:[#allocation17 + $0x2e4] ss:$28 sps:$4 sm:$0xff]  }
 0x285   :  { %2517 = vmatprep.subr.bf16.mxu1 %v3345_v62  ;;  %v3394_v62 = vld [vmem:[#allocation17 + $0x2e0] ss:$28 sps:$4 sm:$0xff]  }
 0x288   :  { %2518 = vmatpush1.bf16.msra.mxu1 %v3343_v63  ;;  %v3402_v63 = vld [vmem:[#allocation17 + $0x2ac] ss:$28 sps:$4 sm:$0xff]  }
 0x33f   :  { %v3047_v40 = vpop.f32.mrf.mxu1 }
 0x341   :  { %v3048_v43 = vpop.f32.mrf.mxu1 }
 0x342   :  { %v3049_v44 = vadd.f32 %v3048_v43, %v3047_v40  ;;  %v3336_v40 = vld [vmem:[#allocation17 + $0x194] ss:$28 sps:$4 sm:$0xff]  }
 0x343   :  { %v3050_v45 = vpop.f32.mrf.mxu1 }
 0x344   :  { %v4040_v46 = vadd.f32 %v3049_v44, %v2886_v42  ;;  %v3334_v42 = vld [vmem:[#allocation17 + $0x190] ss:$28 sps:$4 sm:$0xff]   ;;  %v3342_v44 = vld [vmem:[#allocation17 + $0x15c] ss:$28 sps:$4 sm:$0xff]  }
 0x345   :  { %v3051_v47 = vpop.f32.mrf.mxu1  ;;  %v3340_v45 = vld [vmem:[#allocation17 + $0x158] ss:$28 sps:$4 sm:$0xff]  }
 0x346   :  { %1514 = vst [vmem:[%s4132_s19] sm:$0xff] %v4040_v46  ;;  %v1515_v48 = vpack.c.bf16 %v4040_v46, %v4040_v46  ;;  %v1673_v49 = vmul.f32 0.5, %v4040_v46  ;;  %v3348_v47 = vld [vmem:[#allocation17 + $0x124] ss:$28 sps:$4 sm:$0xff]  }
 0x348   :  { %v1674_v51 = vmul.f32 1.442695, %v1673_v49  ;;  %3093 = vmatmul.mubr.msk.bf16.vlgmr.msra.gmra.mxu0 %vm1539_vm3, %v1515_v48  ;;  %v3346_v48 = vld [vmem:[#allocation17 + $0x120] ss:$28 sps:$4 sm:$0xff]   ;;  %v3354_v49 = vld [vmem:[#allocation17 + $0xec] ss:$28 sps:$4 sm:$0xff]  }
 0x349   :  { %3102 = vmatprep.mubr.msk.bf16.mxu0 %vm3829_vm2, %v3828_v16  ;;  %3097 = vmatpush3.bf16.msra.mxu0 %v3322_v50  ;;  %v3366_v50 = vld [vmem:[#allocation17 + $0x7c] ss:$28 sps:$4 sm:$0xff]  }
 0x34a   :  { %3519 = vpow2.f32 %v1674_v51  ;;  %3098 = vmatprep.subr.bf16.mxu0 %v3828_v16  ;;  %v3358_v51 = vld [vmem:[#allocation17 + $0xb0] ss:$28 sps:$4 sm:$0xff]  }
 0x34d   :  { %3099 = vmatpush3.bf16.msra.mxu0 %v3323_v52  ;;  %v3364_v52 = vld [vmem:[#allocation17 + $0x78] ss:$28 sps:$4 sm:$0xff]  }
 0x34e   :  { %3100 = vmatprep.subr.bf16.mxu0 %v3828_v16  ;;  %v3351_v16 = vld [vmem:[#allocation17 + $0xe4] ss:$28 sps:$4 sm:$0xff]  }
 0x34f   :  { %2519 = vmatprep.subr.bf16.mxu1 %v3351_v16  ;;  %v3400_v16 = vld [vmem:[#allocation17 + $0x2a8] ss:$28 sps:$4 sm:$0xff]  }
 0x350   :  { %2520 = vmatpush1.bf16.msra.mxu1 %v3349_v1  ;;  %v3405_v1 = vld [vmem:[#allocation17 + $0x26c] ss:$28 sps:$4 sm:$0xff]  }
 0x351   :  { %3101 = vmatpush3.bf16.msra.mxu0 %v3324_v56  ;;  %2521 = vmatprep.subr.bf16.mxu1 %v3357_v2  ;;  %v3376_v56 = vld [vmem:[#allocation17 + $0x8] ss:$28 sps:$4 sm:$0xff]   ;;  %v3408_v2 = vld [vmem:[#allocation17 + $0x274] ss:$28 sps:$4 sm:$0xff]  }
 0x352   :  { %1739 = vmatprep.subr.bf16.mxu0 %v3327_v57  ;;  %v3384_v57 = vld [vmem:[#allocation17 + $0x354] ss:$28 sps:$4 sm:$0xff]  }
 0x354   :  { %2522 = vmatpush1.bf16.msra.mxu1 %v3355_v3  ;;  %v3403_v3 = vld [vmem:[#allocation17 + $0x268] ss:$28 sps:$4 sm:$0xff]  }
 0x355   :  { %2523 = vmatprep.subr.bf16.mxu1 %v3363_v4  ;;  %v3406_v4 = vld [vmem:[#allocation17 + $0x270] ss:$28 sps:$4 sm:$0xff]  }
 0x357   :  { %v3520_v54 = vpop.eup %3519 }
 0x358   :  { %v1681_v55 = vmul.f32 %v3520_v54, %v1679_v53  ;;  %2524 = vmatpush1.bf16.msra.mxu1 %v3361_v5  ;;  %v3372_v53 = vld [vmem:[#allocation17 + $0x44] ss:$28 sps:$4 sm:$0xff]   ;;  %v3411_v5 = vld [vmem:[#allocation17 + $0x234] ss:$28 sps:$4 sm:$0xff]  }
 0x359   :  { %2525 = vmatprep.subr.bf16.mxu1 %v3369_v6  ;;  %v3370_v54 = vld [vmem:[#allocation17 + $0x40] ss:$28 sps:$4 sm:$0xff]  }
 0x35a   :  { %1683 = vrot.lane.b32.xlu0 %v1681_v55, %s3831_s7  ;;  %v3378_v55 = vld [vmem:[#allocation17 + $0xc] ss:$28 sps:$4 sm:$0xff]   ;;  %v3414_v6 = vld [vmem:[#allocation17 + $0x23c] ss:$28 sps:$4 sm:$0xff]  }
 0x35c   :  { %2526 = vmatpush1.bf16.msra.mxu1 %v3367_v7  ;;  %v3409_v7 = vld [vmem:[#allocation17 + $0x230] ss:$28 sps:$4 sm:$0xff]  }
 0x35d   :  { %2527 = vmatprep.subr.bf16.mxu1 %v3375_v8  ;;  %v3412_v8 = vld [vmem:[#allocation17 + $0x238] ss:$28 sps:$4 sm:$0xff]  }
 0x360   :  { %2528 = vmatpush1.bf16.msra.mxu1 %v3373_v9  ;;  %v3417_v9 = vld [vmem:[#allocation17 + $0x1fc] ss:$28 sps:$4 sm:$0xff]  }
 0x361   :  { %2529 = vmatprep.subr.bf16.mxu1 %v3381_v10  ;;  %v3420_v10 = vld [vmem:[#allocation17 + $0x204] ss:$28 sps:$4 sm:$0xff]  }
 0x364   :  { %2530 = vmatpush2.bf16.msra.mxu1 %v3379_v11  ;;  %v3415_v11 = vld [vmem:[#allocation17 + $0x1f8] ss:$28 sps:$4 sm:$0xff]  }
 0x365   :  { %2531 = vmatprep.subr.bf16.mxu1 %v3387_v12  ;;  %v3418_v12 = vld [vmem:[#allocation17 + $0x200] ss:$28 sps:$4 sm:$0xff]  }
 0x368   :  { %2532 = vmatpush2.bf16.msra.mxu1 %v3385_v13  ;;  %v3423_v13 = vld [vmem:[#allocation17 + $0x1c4] ss:$28 sps:$4 sm:$0xff]  }
 0x369   :  { %2533 = vmatprep.subr.bf16.mxu1 %v3393_v14  ;;  %v3426_v14 = vld [vmem:[#allocation17 + $0x1cc] ss:$28 sps:$4 sm:$0xff]  }
 0x36c   :  { %2534 = vmatpush2.bf16.msra.mxu1 %v3391_v15  ;;  %v3421_v15 = vld [vmem:[#allocation17 + $0x1c0] ss:$28 sps:$4 sm:$0xff]  }
 0x36d   :  { %2535 = vmatprep.subr.bf16.mxu1 %v3399_v17  ;;  %v3424_v17 = vld [vmem:[#allocation17 + $0x1c8] ss:$28 sps:$4 sm:$0xff]  }
 0x370   :  { %2536 = vmatpush2.bf16.msra.mxu1 %v3397_v18  ;;  %v3429_v18 = vld [vmem:[#allocation17 + $0x19c] ss:$28 sps:$4 sm:$0xff]  }
 0x371   :  { %2537 = vmatprep.subr.bf16.mxu1 %v3405_v1  ;;  %v3449_v1 = vld [vmem:[#allocation17 + $0xbc] ss:$28 sps:$4 sm:$0xff]  }
 0x374   :  { %2538 = vmatpush2.bf16.msra.mxu1 %v3403_v3  ;;  %v1661_v3 = vand.u32 127, %v196_v22 }
 0x375   :  { %2539 = vmatprep.subr.bf16.mxu1 %v3411_v5  ;;  %v3451_v5 = vld [vmem:[#allocation17 + $0xc0] ss:$28 sps:$4 sm:$0xff]  }
 0x376   :  { %vm1664_vm5 = vcmp.eq.s32.totalorder %v1661_v3, 1  ;;  %vm1662_vm6 = vcmp.eq.s32.totalorder %v1661_v3, 0 }
 0x378   :  { %2540 = vmatpush2.bf16.msra.mxu1 %v3409_v7  ;;  %v3455_v7 = vld [vmem:[#allocation17 + $0x248] ss:$28 sps:$4 sm:$0xff]  }
 0x379   :  { %2541 = vmatprep.subr.bf16.mxu1 %v3417_v9  ;;  %v3456_v9 = vld [vmem:[#allocation17 + $0x88] ss:$28 sps:$4 sm:$0xff]  }
 0x37c   :  { %2542 = vmatpush2.bf16.msra.mxu1 %v3415_v11  ;;  %v3459_v11 = vld [vmem:[#allocation17 + $0x4c] ss:$28 sps:$4 sm:$0xff]  }
 0x37d   :  { %2543 = vmatprep.subr.bf16.mxu1 %v3423_v13 }
 0x380   :  { %2544 = vmatpush2.bf16.msra.mxu1 %v3421_v15  ;;  %v3457_v15 = vld [vmem:[#allocation17 + $0x48] ss:$28 sps:$4 sm:$0xff]  }
 0x381   :  { %2595 = vmatprep.subr.bf16.mxu1 %v3429_v18  ;;  %v3464_v18 = vld [vmem:[#allocation17 + $0x14] ss:$28 sps:$4 sm:$0xff]  }
 0x3cc   :  { %v1684_v34 = vpop.permute.xlu0 %1683 }
 0x3cd   :  { %v1686_v39 = vadd.f32 %v1684_v34, %v4040_v46  ;;  %v3360_v46 = vld [vmem:[#allocation17 + $0xb4] ss:$28 sps:$4 sm:$0xff]  }
 0x3cf   :  { %v1687_v43 = vpack.c.bf16 %v1686_v39, %v1686_v39 }
 0x408   :  { %v1577_v20 = vpop.f32.mrf.mxu0 }
 0x409   :  { %v1578_v21 = vadd.f32 %v2903_v19, %v1577_v20  ;;  %v3430_v19 = vld [vmem:[#allocation17 + $0x360] ss:$28 sps:$4 sm:$0xff]   ;;  %v2907_v20 = vld [vmem:[%s4124_s11] ss:$0 sm:$0xff] }
 0x40a   :  { %v3094_v26 = vpop.f32.mrf.mxu0 }
 0x40b   :  { %v1583_v29 = vmax.f32 %v1578_v21, 0.0 }
 0x40c   :  { %v1580_v30 = vpop.f32.mrf.mxu0 }
 0x40d   :  { %v1584_v32 = vpack.c.bf16 %v1583_v29, %v1583_v29  ;;  %v1692_v30 = vld [vmem:[%s4126_s13] sm:$0x3] }
 0x40e   :  { %v3095_v37 = vpop.f32.mrf.mxu0  ;;  %v1697_v34 = vrot.slane %v1692_v30, %v3994_v24 }
 0x40f   :  { %3103 = vmatmul.mubr.msk.bf16.vlgmr.msra.gmra.mxu0 %vm1616_vm4, %v1584_v32 }
 0x410   :  { %1740 = vmatpush1.bf16.msra.mxu0 %v3325_v31  ;;  %1759 = vmatprep.mubr.bf16.mxu0 %v3827_v0  ;;  %v3352_v0 = vld [vmem:[#allocation17 + $0xe8] ss:$28 sps:$4 sm:$0xff]  }
 0x411   :  { %1741 = vmatprep.subr.bf16.mxu0 %v3330_v33 }
 0x414   :  { %1742 = vmatpush1.bf16.msra.mxu0 %v3328_v38  ;;  %v1701_v38 = vrot.slane %v1692_v30, %v3998_v27  ;;  %v3472_v30 = vld [vmem:[#allocation17 + $0x324] ss:$28 sps:$4 sm:$0xff]  }
 0x415   :  { %2554 = vmatprep.subr.bf16.mxu0 %v3336_v40 }
 0x417   :  { %2916 = vmatmul.mubr.msk.bf16.vlgmr.msra.gmra.mxu0 %vm1539_vm3, %v1687_v43 }
 0x418   :  { %2555 = vmatpush1.bf16.msra.mxu0 %v3334_v42 }
 0x419   :  { %2556 = vmatprep.subr.bf16.mxu0 %v3342_v44 }
 0x41c   :  { %2557 = vmatpush1.bf16.msra.mxu0 %v3340_v45 }
 0x41d   :  { %2558 = vmatprep.subr.bf16.mxu0 %v3348_v47 }
 0x420   :  { %2559 = vmatpush1.bf16.msra.mxu0 %v3346_v48 }
 0x421   :  { %2560 = vmatprep.subr.bf16.mxu0 %v3354_v49 }
 0x424   :  { %2561 = vmatpush1.bf16.msra.mxu0 %v3352_v0  ;;  %v3427_v0 = vld [vmem:[#allocation17 + $0x198] ss:$28 sps:$4 sm:$0xff]  }
 0x425   :  { %2562 = vmatprep.subr.bf16.mxu0 %v3360_v46  ;;  %v3431_v46 = vld [vmem:[#allocation17 + $0x1a0] ss:$28 sps:$4 sm:$0xff]  }
 0x428   :  { %2563 = vmatpush1.bf16.msra.mxu0 %v3358_v51 }
 0x429   :  { %2564 = vmatprep.subr.bf16.mxu0 %v3366_v50  ;;  %v3434_v50 = vld [vmem:[#allocation17 + $0x164] ss:$28 sps:$4 sm:$0xff]  }
 0x42c   :  { %2565 = vmatpush1.bf16.msra.mxu0 %v3364_v52  ;;  %v3435_v52 = vld [vmem:[#allocation17 + $0x328] ss:$28 sps:$4 sm:$0xff]  }
 0x42d   :  { %2566 = vmatprep.subr.bf16.mxu0 %v3372_v53  ;;  %v3432_v53 = vld [vmem:[#allocation17 + $0x160] ss:$28 sps:$4 sm:$0xff]  }
 0x430   :  { %2567 = vmatpush1.bf16.msra.mxu0 %v3370_v54  ;;  %v3436_v54 = vld [vmem:[#allocation17 + $0x168] ss:$28 sps:$4 sm:$0xff]  }
 0x431   :  { %2568 = vmatprep.subr.bf16.mxu0 %v3378_v55 }
 0x434   :  { %2569 = vmatpush1.bf16.msra.mxu0 %v3376_v56  ;;  %v3439_v56 = vld [vmem:[#allocation17 + $0x12c] ss:$28 sps:$4 sm:$0xff]  }
 0x435   :  { %2570 = vmatprep.subr.bf16.mxu0 %v3384_v57  ;;  %v3440_v57 = vld [vmem:[#allocation17 + $0x2f0] ss:$28 sps:$4 sm:$0xff]  }
 0x438   :  { %2571 = vmatpush2.bf16.msra.mxu0 %v3382_v58 }
 0x439   :  { %2572 = vmatprep.subr.bf16.mxu0 %v3390_v59  ;;  %v3437_v59 = vld [vmem:[#allocation17 + $0x128] ss:$28 sps:$4 sm:$0xff]  }
 0x43c   :  { %2573 = vmatpush2.bf16.msra.mxu0 %v3388_v60  ;;  %v3441_v60 = vld [vmem:[#allocation17 + $0x130] ss:$28 sps:$4 sm:$0xff]  }
 0x43d   :  { %2574 = vmatprep.subr.bf16.mxu0 %v3396_v61  ;;  %v3444_v61 = vld [vmem:[#allocation17 + $0xf4] ss:$28 sps:$4 sm:$0xff]  }
 0x440   :  { %2575 = vmatpush2.bf16.msra.mxu0 %v3394_v62  ;;  %v3445_v62 = vld [vmem:[#allocation17 + $0x2b8] ss:$28 sps:$4 sm:$0xff]  }
 0x441   :  { %2576 = vmatprep.subr.bf16.mxu0 %v3402_v63  ;;  %v3442_v63 = vld [vmem:[#allocation17 + $0xf0] ss:$28 sps:$4 sm:$0xff]  }
 0x444   :  { %2577 = vmatpush2.bf16.msra.mxu0 %v3400_v16  ;;  %v3446_v16 = vld [vmem:[#allocation17 + $0xf8] ss:$28 sps:$4 sm:$0xff]  }
 0x445   :  { %2578 = vmatprep.subr.bf16.mxu0 %v3408_v2  ;;  %v3450_v2 = vld [vmem:[#allocation17 + $0x280] ss:$28 sps:$4 sm:$0xff]  }
 0x448   :  { %2579 = vmatpush2.bf16.msra.mxu0 %v3406_v4  ;;  %v3447_v4 = vld [vmem:[#allocation17 + $0xb8] ss:$28 sps:$4 sm:$0xff]  }
 0x449   :  { %2580 = vmatprep.subr.bf16.mxu0 %v3414_v6  ;;  %v3454_v6 = vld [vmem:[#allocation17 + $0x84] ss:$28 sps:$4 sm:$0xff]  }
 0x44c   :  { %2581 = vmatpush2.bf16.msra.mxu0 %v3412_v8  ;;  %v3452_v8 = vld [vmem:[#allocation17 + $0x80] ss:$28 sps:$4 sm:$0xff]  }
 0x44d   :  { %2582 = vmatprep.subr.bf16.mxu0 %v3420_v10 }
 0x450   :  { %2583 = vmatpush2.bf16.msra.mxu0 %v3418_v12  ;;  %v3460_v12 = vld [vmem:[#allocation17 + $0x210] ss:$28 sps:$4 sm:$0xff]  }
 0x451   :  { %2584 = vmatprep.subr.bf16.mxu0 %v3426_v14 }
 0x454   :  { %2585 = vmatpush2.bf16.msra.mxu0 %v3424_v17  ;;  %v3461_v17 = vld [vmem:[#allocation17 + $0x50] ss:$28 sps:$4 sm:$0xff]  }
 0x455   :  { %3060 = vmatprep.subr.bf16.mxu0 %v3430_v19  ;;  %v3465_v19 = vld [vmem:[#allocation17 + $0x1d8] ss:$28 sps:$4 sm:$0xff]  }
 0x4cf   :  { %v1654_v21 = vpop.f32.mrf.mxu0 }
 0x4d0   :  { %v4063_v26 = vadd.f32 %v2907_v20, %v1654_v21  ;;  %v3462_v20 = vld [vmem:[#allocation17 + $0x10] ss:$28 sps:$4 sm:$0xff]   ;;  %v3466_v21 = vld [vmem:[#allocation17 + $0x18] ss:$28 sps:$4 sm:$0xff]  }
 0x4d1   :  { %v3104_v29 = vpop.f32.mrf.mxu0 }
 0x4d2   :  { %v1665_v31 = vsub.f32 0.0, %v4063_v26  ;;  %v3467_v29 = vld [vmem:[#allocation17 + $0x358] ss:$28 sps:$4 sm:$0xff]  }
 0x4d3   :  { %v1657_v32 = vpop.f32.mrf.mxu0 }
 0x4d4   :  { %v1666_v33 = vmul.f32 1.442695, %v1665_v31  ;;  %v3470_v31 = vld [vmem:[#allocation17 + $0x320] ss:$28 sps:$4 sm:$0xff]   ;;  %v3475_v32 = vld [vmem:[#allocation17 + $0x2ec] ss:$28 sps:$4 sm:$0xff]  }
 0x4d5   :  { %v3105_v37 = vpop.f32.mrf.mxu0 }
 0x4d6   :  { %3521 = vpow2.f32 %v1666_v33  ;;  %v3473_v33 = vld [vmem:[#allocation17 + $0x2e8] ss:$28 sps:$4 sm:$0xff]   ;;  %v3476_v37 = vld [vmem:[#allocation17 + $0x2b0] ss:$28 sps:$4 sm:$0xff]  }
 0x4d7   :  { %v1761_v39 = vpop.f32.mrf.mxu0 }
 0x4d8   :  { %v1762_v40 = vadd.f32 %v1761_v39, %v1697_v34  ;;  %v3478_v34 = vld [vmem:[#allocation17 + $0x2b4] ss:$28 sps:$4 sm:$0xff]  }
 0x4d9   :  { %v1763_v42 = vpop.f32.mrf.mxu0  ;;  %v3479_v39 = vld [vmem:[#allocation17 + $0x278] ss:$28 sps:$4 sm:$0xff]  }
 0x4da   :  { %v1764_v43 = vadd.f32 %v1763_v42, %v1701_v38  ;;  %v1768_v44 = vmax.f32 %v1762_v40, 0.0  ;;  %v3481_v38 = vld [vmem:[#allocation17 + $0x27c] ss:$28 sps:$4 sm:$0xff]   ;;  %v3484_v40 = vld [vmem:[#allocation17 + $0x244] ss:$28 sps:$4 sm:$0xff]  }
 0x4db   :  { %v1765_v45 = vpop.f32.mrf.mxu0  ;;  %v3482_v42 = vld [vmem:[#allocation17 + $0x240] ss:$28 sps:$4 sm:$0xff]  }
 0x4dc   :  { %v1769_v47 = vmax.f32 %v1764_v43, 0.0  ;;  %v4071_v51 = vpack.c.bf16 %v1768_v44, %v1768_v44  ;;  %v3487_v43 = vld [vmem:[#allocation17 + $0x20c] ss:$28 sps:$4 sm:$0xff]   ;;  %v3490_v45 = vld [vmem:[#allocation17 + $0x1d4] ss:$28 sps:$4 sm:$0xff]  }
 0x4dd   :  { %v1766_v48 = vpop.f32.mrf.mxu0  ;;  %v3485_v44 = vld [vmem:[#allocation17 + $0x208] ss:$28 sps:$4 sm:$0xff]  }
 0x4de   :  { %v1771_v49 = vpack.c.bf16 %v1769_v47, %v1769_v47  ;;  %v3488_v47 = vld [vmem:[#allocation17 + $0x1d0] ss:$28 sps:$4 sm:$0xff]  }
 0x4e0   :  { %2545 = vmatprep.mubr.bf16.mxu1 %v1771_v49  ;;  %2586 = vmatprep.mubr.bf16.mxu0 %v1771_v49 }
 0x4e1   :  { %2546 = vmatmul.mubr.bf16.vlgmr.msra.gmra.mxu1 %v4071_v51  ;;  %2587 = vmatmul.mubr.bf16.vlgmr.msra.gmra.mxu0 %v4071_v51 }
 0x4e2   :  { %2596 = vmatpush1.bf16.msra.mxu1 %v3427_v0  ;;  %3061 = vmatpush3.bf16.msra.mxu0 %v3431_v46 }
 0x4e3   :  { %v3522_v55 = vpop.eup %3521  ;;  %2627 = vmatprep.mubr.bf16.mxu1 %v1771_v49  ;;  %2668 = vmatprep.mubr.bf16.mxu0 %v1771_v49 }
 0x4e4   :  { %v1668_v58 = vadd.f32 1.0, %v3522_v55  ;;  %2597 = vmatprep.subr.bf16.mxu1 %v3434_v50  ;;  %3062 = vmatprep.subr.bf16.mxu0 %v3435_v52 }
 0x4e6   :  { %3523 = vrcp.f32 %v1668_v58  ;;  %2598 = vmatpush1.bf16.msra.mxu1 %v3432_v53  ;;  %3063 = vmatpush3.bf16.msra.mxu0 %v3436_v54 }
 0x4e7   :  { %3525 = vtanh.f32 %v4063_v26  ;;  %2599 = vmatprep.subr.bf16.mxu1 %v3439_v56  ;;  %3064 = vmatprep.subr.bf16.mxu0 %v3440_v57 }
 0x4ea   :  { %2600 = vmatpush1.bf16.msra.mxu1 %v3437_v59  ;;  %3065 = vmatpush3.bf16.msra.mxu0 %v3441_v60 }
 0x4eb   :  { %2601 = vmatprep.subr.bf16.mxu1 %v3444_v61  ;;  %3066 = vmatprep.subr.bf16.mxu0 %v3445_v62 }
 0x4ee   :  { %2602 = vmatpush1.bf16.msra.mxu1 %v3442_v63  ;;  %3067 = vmatpush3.bf16.msra.mxu0 %v3446_v16 }
 0x4ef   :  { %2603 = vmatprep.subr.bf16.mxu1 %v3449_v1  ;;  %3068 = vmatprep.subr.bf16.mxu0 %v3450_v2 }
 0x4f2   :  { %2604 = vmatpush1.bf16.msra.mxu1 %v3447_v4  ;;  %3069 = vmatpush3.bf16.msra.mxu0 %v3451_v5 }
 0x4f3   :  { %v3524_v10 = vpop.eup %3523  ;;  %2605 = vmatprep.subr.bf16.mxu1 %v3454_v6  ;;  %3070 = vmatprep.subr.bf16.mxu0 %v3455_v7 }
 0x4f4   :  { %v3526_v22 = vpop.eup %3525  ;;  %v1670_v13 = vsel %vm1664_vm5, %v3524_v10, %v4063_v26  ;;  %v3469_v26 = vld [vmem:[#allocation17 + $0x35c] ss:$28 sps:$4 sm:$0xff]  }
 0x4f5   :  { %v1671_v14 = vsel %vm1662_vm6, %v3526_v22, %v1670_v13 }
 0x4f6   :  { %1672 = vst [vmem:[%s4129_s16] sm:$0xff] %v1671_v14  ;;  %2606 = vmatpush1.bf16.msra.mxu1 %v3452_v8  ;;  %3071 = vmatpush3.bf16.msra.mxu0 %v3456_v9  ;;  %s3832_s16 = smov [#allocation20]  }
 0x4f7   :  { %2607 = vmatprep.subr.bf16.mxu1 %v3459_v11  ;;  %3072 = vmatprep.subr.bf16.mxu0 %v3460_v12  ;;  %s2736_s10 = sshll.u32 %s3832_s16, 4  ;;  %s2737_s10 = int_to_ptr.vmem [resolvable:$true] %s2736_s10 }
 0x4f8   :  { %s3755_s4 = scalar_lea.vmem %s2737_s10, 896  ;;  %p3760_p9 = scmp.lt.s32.totalorder %s2737_s10, %s2737_s10 }
 0x4f9   :  { %p3756_p8 = scmp.ne.s32.totalorder %s2737_s10, %s3755_s4  ;;  %p3761_p10 = scmp.lt.s32.totalorder %s3755_s4, %s3755_s4 }
 0x4fa   :  { %2608 = vmatpush1.bf16.msra.mxu1 %v3457_v15  ;;  %3073 = vmatpush3.bf16.msra.mxu0 %v3461_v17 }
 0x4fb   :  { %2609 = vmatprep.subr.bf16.mxu1 %v3464_v18  ;;  %3074 = vmatprep.subr.bf16.mxu0 %v3465_v19  ;;  %p3762_p11 = por %p3761_p10, %p3760_p9 }
 0x4fd   :  { %p3763_p12 = pnand %p3762_p11, %p3756_p8 }
 0x4fe   :  { %2610 = vmatpush1.bf16.msra.mxu1 %v3462_v20  ;;  %3075 = vmatpush3.bf16.msra.mxu0 %v3466_v21 }
 0x4ff   :  { %2611 = vmatprep.subr.bf16.mxu1 %v3469_v26 }
 0x501   :  { %2669 = vmatmul.mubr.bf16.vlgmr.msra.gmra.mxu0 %v4071_v51 }
 0x502   :  { %2612 = vmatpush2.bf16.msra.mxu1 %v3467_v29 }
 0x503   :  { %2613 = vmatprep.subr.bf16.mxu1 %v3472_v30 }
 0x506   :  { %2614 = vmatpush2.bf16.msra.mxu1 %v3470_v31 }
 0x507   :  { %2615 = vmatprep.subr.bf16.mxu1 %v3475_v32 }
 0x50a   :  { %2616 = vmatpush2.bf16.msra.mxu1 %v3473_v33 }
 0x50b   :  { %2617 = vmatprep.subr.bf16.mxu1 %v3478_v34 }
 0x50e   :  { %2618 = vmatpush2.bf16.msra.mxu1 %v3476_v37 }
 0x50f   :  { %2619 = vmatprep.subr.bf16.mxu1 %v3481_v38 }
 0x512   :  { %2620 = vmatpush2.bf16.msra.mxu1 %v3479_v39 }
 0x513   :  { %2621 = vmatprep.subr.bf16.mxu1 %v3484_v40 }
 0x516   :  { %2622 = vmatpush2.bf16.msra.mxu1 %v3482_v42 }
 0x517   :  { %2623 = vmatprep.subr.bf16.mxu1 %v3487_v43 }
 0x51a   :  { %2624 = vmatpush2.bf16.msra.mxu1 %v3485_v44 }
 0x51b   :  { %2625 = vmatprep.subr.bf16.mxu1 %v3490_v45 }
 0x51e   :  { %2626 = vmatpush2.bf16.msra.mxu1 %v3488_v47 }
 0x521   :  { %2628 = vmatmul.mubr.bf16.vlgmr.msra.gmra.mxu1 %v4071_v51 }
 0x522   :  { %3766 = shalt.err (!%p3763_p12)
}
 0x523   :  { %2739 = dma.vmem_to_hbm [thread:$0]  %s2737_s10, 896, %s4131_s18, [#allocation21]   ;;  %v4089_v48 = vld [vmem:[%s4128_s15] sm:$0xff] }
 0x524   :  { %v1905_v49 = vrot.slane %v4089_v48, %v3994_v24  ;;  %v1913_v0 = vrot.slane %v4089_v48, %v206_v25  ;;  %v1909_v46 = vrot.slane %v4089_v48, %v3998_v27  ;;  %v1917_v51 = vrot.slane %v4089_v48, %v210_v28  ;;  %s3833_s15 = smov [#allocation19]  }
 0x525   :  { %v1929_v12 = vrot.slane %v4089_v48, %v222_v36  ;;  %v1921_v36 = vrot.slane %v4089_v48, %v214_v35  ;;  %v1925_v32 = vrot.slane %v4089_v48, %v218_v41  ;;  %s2726_s18 = sshll.u32 %s3833_s15, 4  ;;  %s2727_s18 = int_to_ptr.vmem [resolvable:$true] %s2726_s18 }
 0x526   :  { %s3775_s6 = scalar_lea.vmem %s2727_s18, 896  ;;  %p3780_p0 = scmp.lt.s32.totalorder %s2727_s18, %s2727_s18 }
 0x527   :  { %p3776_p13 = scmp.ne.s32.totalorder %s2727_s18, %s3775_s6  ;;  %p3781_p1 = scmp.lt.s32.totalorder %s3775_s6, %s3775_s6 }
 0x529   :  { %p3782_p2 = por %p3781_p1, %p3780_p0 }
 0x52b   :  { %p3783_p3 = pnand %p3782_p2, %p3776_p13 }
 0x5a1   :  { %v2547_v50 = vpop.f32.mrf.mxu1  ;;  %v2588_v52 = vpop.f32.mrf.mxu0 }
 0x5a2   :  { %v2548_v53 = vadd.f32 %v2547_v50, %v1905_v49  ;;  %v2589_v54 = vadd.f32 %v2588_v52, %v1913_v0 }
 0x5a3   :  { %v2549_v55 = vpop.f32.mrf.mxu1  ;;  %v2590_v56 = vpop.f32.mrf.mxu0 }
 0x5a4   :  { %v2676_v57 = vsub.f32 0.0, %v2548_v53  ;;  %v2678_v58 = vsub.f32 0.0, %v2589_v54  ;;  %v2550_v24 = vadd.f32 %v2549_v55, %v1909_v46  ;;  %v2591_v59 = vadd.f32 %v2590_v56, %v1917_v51 }
 0x5a5   :  { %v2551_v60 = vpop.f32.mrf.mxu1  ;;  %v2592_v61 = vpop.f32.mrf.mxu0 }
 0x5a6   :  { %v2683_v25 = vmul.f32 1.442695, %v2676_v57  ;;  %v2687_v62 = vmul.f32 1.442695, %v2678_v58  ;;  %v2677_v63 = vsub.f32 0.0, %v2550_v24  ;;  %v2679_v27 = vsub.f32 0.0, %v2591_v59 }
 0x5a7   :  { %v2552_v16 = vpop.f32.mrf.mxu1  ;;  %v2593_v1 = vpop.f32.mrf.mxu0 }
 0x5a8   :  { %3527 = vpow2.f32 %v2683_v25  ;;  %v2685_v28 = vmul.f32 1.442695, %v2677_v63  ;;  %v2689_v2 = vmul.f32 1.442695, %v2679_v27 }
 0x5a9   :  { %3529 = vpow2.f32 %v2687_v62 }
 0x5aa   :  { %3531 = vpow2.f32 %v2685_v28 }
 0x5ab   :  { %3533 = vpow2.f32 %v2689_v2 }
 0x5b5   :  { %v3528_v3 = vpop.eup %3527 }
 0x5b6   :  { %v3530_v4 = vpop.eup %3529  ;;  %v2697_v5 = vadd.f32 1.0, %v3528_v3 }
 0x5b7   :  { %v3532_v6 = vpop.eup %3531  ;;  %v2699_v7 = vadd.f32 1.0, %v3530_v4 }
 0x5b8   :  { %v3534_v8 = vpop.eup %3533  ;;  %3535 = vrcp.f32 %v2697_v5  ;;  %v2698_v9 = vadd.f32 1.0, %v3532_v6 }
 0x5b9   :  { %3537 = vrcp.f32 %v2699_v7  ;;  %v2700_v10 = vadd.f32 1.0, %v3534_v8 }
 0x5ba   :  { %3539 = vrcp.f32 %v2698_v9 }
 0x5bb   :  { %3541 = vrcp.f32 %v2700_v10 }
 0x5c1   :  { %v3076_v11 = vpop.f32.mrf.mxu0 }
 0x5c3   :  { %v3077_v22 = vpop.f32.mrf.mxu0 }
 0x5c4   :  { %v3078_v13 = vadd.f32 %v3077_v22, %v3076_v11 }
 0x5c5   :  { %v3536_v14 = vpop.eup %3535  ;;  %v3079_v15 = vpop.f32.mrf.mxu0 }
 0x5c6   :  { %v3538_v17 = vpop.eup %3537  ;;  %2711 = vst [vmem:[#allocation19] sm:$0xff] %v3536_v14  ;;  %v2671_v18 = vadd.f32 %v3078_v13, %v1929_v12 }
 0x5c7   :  { %v3540_v19 = vpop.eup %3539  ;;  %2713 = vst [vmem:[#allocation19 + $0x10] sm:$0xff] %v3538_v17  ;;  %v3080_v20 = vpop.f32.mrf.mxu0 }
 0x5c8   :  { %v3542_v21 = vpop.eup %3541  ;;  %2712 = vst [vmem:[#allocation19 + $0x8] sm:$0xff] %v3540_v19  ;;  %v2682_v26 = vsub.f32 0.0, %v2671_v18 }
 0x5c9   :  { %2714 = vst [vmem:[#allocation19 + $0x18] sm:$0xff] %v3542_v21 }
 0x5ca   :  { %v2695_v29 = vmul.f32 1.442695, %v2682_v26 }
 0x5cc   :  { %3543 = vpow2.f32 %v2695_v29 }
 0x5d9   :  { %v3544_v30 = vpop.eup %3543 }
 0x5da   :  { %v2703_v31 = vadd.f32 1.0, %v3544_v30 }
 0x5dc   :  { %3545 = vrcp.f32 %v2703_v31 }
 0x5e1   :  { %v2629_v33 = vpop.f32.mrf.mxu1 }
 0x5e2   :  { %v2630_v34 = vadd.f32 %v2629_v33, %v1921_v36 }
 0x5e3   :  { %v2631_v37 = vpop.f32.mrf.mxu1 }
 0x5e4   :  { %v2680_v38 = vsub.f32 0.0, %v2630_v34  ;;  %v2632_v39 = vadd.f32 %v2631_v37, %v1925_v32 }
 0x5e5   :  { %v2633_v40 = vpop.f32.mrf.mxu1 }
 0x5e6   :  { %v2691_v42 = vmul.f32 1.442695, %v2680_v38  ;;  %v2681_v43 = vsub.f32 0.0, %v2632_v39 }
 0x5e7   :  { %v2634_v44 = vpop.f32.mrf.mxu1 }
 0x5e8   :  { %3547 = vpow2.f32 %v2691_v42  ;;  %v2693_v45 = vmul.f32 1.442695, %v2681_v43 }
 0x5e9   :  { %v3546_v47 = vpop.eup %3545 }
 0x5ea   :  { %2717 = vst [vmem:[#allocation19 + $0x30] sm:$0xff] %v3546_v47  ;;  %3549 = vpow2.f32 %v2693_v45 }
 0x5f5   :  { %v3548_v49 = vpop.eup %3547 }
 0x5f6   :  { %v2701_v35 = vadd.f32 1.0, %v3548_v49 }
 0x5f7   :  { %v3550_v0 = vpop.eup %3549 }
 0x5f8   :  { %3551 = vrcp.f32 %v2701_v35  ;;  %v2702_v23 = vadd.f32 1.0, %v3550_v0 }
 0x5fa   :  { %3553 = vrcp.f32 %v2702_v23 }
 0x605   :  { %v3552_v41 = vpop.eup %3551 }
 0x606   :  { %2715 = vst [vmem:[#allocation19 + $0x20] sm:$0xff] %v3552_v41 }
 0x607   :  { %v3554_v48 = vpop.eup %3553 }
 0x608   :  { %2716 = vst [vmem:[#allocation19 + $0x28] sm:$0xff] %v3554_v48 }
 0x609   :  { %3786 = shalt.err (!%p3783_p3)
}
 0x60a   :  { %2729 = dma.vmem_to_hbm [thread:$0]  %s2727_s18, 896, %s4130_s17, [#allocation4]  }
 0x60b   :  { %3807 = dma.done.wait [#allocation4], 896  }
 0x60c   :  { %3808 = vsyncadd [#allocation4], 4294966400 }
 0x60d   :  { %3809 = dma.done.wait [#allocation21], 896  }
 0x60e   :  { %3810 = vsyncadd [#allocation21], 4294966400 }
 0x60f   :  { %2752 = vsyncpa [#allocation3], 1 }
 0x610   :  { %2753 = vsyncpa [#allocation6], 1 }
 0x611   :  { %2754 = vsyncpa [#allocation9], 1 }
 0x612   :  { %2755 = vsyncpa [#allocation12], 1 }
 0x613   :  { %2756 = vsyncpa [#allocation15], 1 }
 0x614   :  { %2757 = vsyncpa [#allocation18], 1 }
 0x615   :  { %2758 = vsyncpa [#allocation4], 1 }
 0x616   :  { %2759 = vsyncpa [#allocation21], 1 }

</bundles_post_ra>
